<compile_context>
chip_gen: v7x
topology: tpu7x:2x2x1
jax: 0.10.0
libtpu: 0.0.40
codegen_flags: <defaults>
</compile_context>

<pallas_src>
import functools

import jax
import jax.numpy as jnp
from jax.experimental import pallas as pl
from jax.experimental.pallas import tpu as pltpu


# ---------------------------------------------------------------------------
# Fused conv-chain (Conv1d k=3,s=1,p=1 [+ PReLU]) kernel
# ---------------------------------------------------------------------------

def _conv_chain_kernel(x_ref, *refs, bb, T, prelu_flags, emit_transposed):
    """Runs a whole conv stack on one (bb, T, C0) batch tile, VMEM-resident.

    refs layout: [w0,b0,a0, w1,b1,a1, ...] + [o_ref (, ot_ref)] + [hbuf scratch]
      w: (3*Cin, Cout) packed taps [x[t-1] | x[t] | x[t+1]],  b: (1, Cout),  a: (1, 1)
      hbuf: (bb, T+2, Cmax) f32 scratch with permanently-zero halo rows.
    """
    n_layers = len(prelu_flags)
    wba = refs[:3 * n_layers]
    hbuf = refs[-1]
    o_ref = refs[3 * n_layers]
    ot_ref = refs[3 * n_layers + 1] if emit_transposed else None

    cmax = hbuf.shape[2]
    zero_halo = jnp.zeros((bb, 1, cmax), jnp.float32)
    hbuf[:, 0:1, :] = zero_halo            # halo rows stay zero across all layers
    hbuf[:, T + 1:T + 2, :] = zero_halo

    h = x_ref[...].astype(jnp.float32)     # (bb, T, C0)
    for li in range(n_layers):
        w_ref, b_ref, a_ref = wba[3 * li], wba[3 * li + 1], wba[3 * li + 2]
        cin = h.shape[-1]
        cout = w_ref.shape[1]
        # Stage activation into the zero-haloed scratch, then build the im2col
        # matrix with lane-axis concatenation of three shifted views.
        hbuf[:, 1:T + 1, :cin] = h
        x3 = jnp.concatenate(
            [hbuf[:, 0:T, :cin], hbuf[:, 1:T + 1, :cin], hbuf[:, 2:T + 2, :cin]],
            axis=-1)                                                # (bb, T, 3*cin)
        # Single MXU matmul per layer: M = bb*T, K = 3*cin  (bf16 in, f32 acc).
        x2 = x3.reshape(bb * T, 3 * cin).astype(jnp.bfloat16)
        w = w_ref[...].astype(jnp.bfloat16)
        y = jnp.dot(x2, w, preferred_element_type=jnp.float32)       # (bb*T, cout)
        y = y.reshape(bb, T, cout) + b_ref[...]
        if prelu_flags[li]:
            y = jnp.where(y > 0, y, a_ref[...] * y)
        h = y

    o_ref[...] = h                         # channels-last (NTC) output
    if emit_transposed:                    # PyTorch-layout (C, T) copy, fused epilogue
        for bi in range(bb):
            ot_ref[bi] = h[bi].T


def _pick_batch_tile(B, T, target_rows=512):
    """Largest divisor of B keeping >=2 grid steps (megacore) and bb*T modest."""
    if B <= 1:
        return 1
    best = 1
    for d in range(1, B + 1):
        if B % d == 0 and d <= B // 2 and d * T <= max(T, target_rows):
            best = d
    return best


def conv_chain(x, layers, *, prelu_flags, emit_transposed=False, batch_tile=None):
    """x: [B, T, C0] f32; layers: list of {'w': (3*Cin, Cout), 'b': (1, Cout), 'alpha': (1,1)}."""
    B, T, C0 = x.shape
    bb = batch_tile if batch_tile is not None else _pick_batch_tile(B, T)
    assert B % bb == 0
    grid = (B // bb,)

    in_specs = [pl.BlockSpec((bb, T, C0), lambda i: (i, 0, 0))]
    args = [x]
    c_max = C0
    for p in layers:
        k3, cout = p["w"].shape
        c_max = max(c_max, cout)
        in_specs += [
            pl.BlockSpec((k3, cout), lambda i: (0, 0)),   # grid-invariant weights
            pl.BlockSpec((1, cout), lambda i: (0, 0)),
            pl.BlockSpec((1, 1), lambda i: (0, 0)),
        ]
        args += [p["w"], p["b"], p["alpha"]]

    c_last = layers[-1]["w"].shape[1]
    out_shape = [jax.ShapeDtypeStruct((B, T, c_last), jnp.float32)]
    out_specs = [pl.BlockSpec((bb, T, c_last), lambda i: (i, 0, 0))]
    if emit_transposed:
        out_shape.append(jax.ShapeDtypeStruct((B, c_last, T), jnp.float32))
        out_specs.append(pl.BlockSpec((bb, c_last, T), lambda i: (i, 0, 0)))

    kernel = functools.partial(
        _conv_chain_kernel, bb=bb, T=T,
        prelu_flags=tuple(bool(f) for f in prelu_flags),
        emit_transposed=emit_transposed)

    outs = pl.pallas_call(
        kernel,
        out_shape=tuple(out_shape),
        grid=grid,
        in_specs=in_specs,
        out_specs=tuple(out_specs),
        scratch_shapes=[pltpu.VMEM((bb, T + 2, c_max), jnp.float32)],
        compiler_params=pltpu.CompilerParams(dimension_semantics=("parallel",)),
    )(*args)
    if emit_transposed:
        return outs[0], outs[1]
    return outs[0]


# ---------------------------------------------------------------------------
# Classifier kernel (3 Linear + softmax(dim=1))
# ---------------------------------------------------------------------------

def _classifier_kernel(h_ref, w1_ref, b1_ref, w2_ref, b2_ref, w3_ref, b3_ref,
                       class_ref, last_ref):
    h = h_ref[...]
    h1 = jnp.dot(h, w1_ref[...], preferred_element_type=jnp.float32) + b1_ref[...]
    h2 = jnp.dot(h1, w2_ref[...], preferred_element_type=jnp.float32) + b2_ref[...]
    logits = jnp.dot(h2, w3_ref[...], preferred_element_type=jnp.float32) + b3_ref[...]
    m = jnp.max(logits, axis=1, keepdims=True)
    e = jnp.exp(logits - m)
    class_ref[...] = e / jnp.sum(e, axis=1, keepdims=True)
    last_ref[...] = h2


def classifier(h_flat, params):
    # NOTE: whole-batch-in-VMEM is fine at these sizes; for very large
    # n_latent*n_times this GEMM should be tiled (v7x 64 MiB VMEM budget).
    B = h_flat.shape[0]
    n_classes = params["w3"].shape[1]
    h2_dim = params["w2"].shape[1]
    return pl.pallas_call(
        _classifier_kernel,
        out_shape=(
            jax.ShapeDtypeStruct((B, n_classes), jnp.float32),
            jax.ShapeDtypeStruct((B, h2_dim), jnp.float32),
        ),
    )(h_flat, params["w1"], params["b1"], params["w2"], params["b2"],
      params["w3"], params["b3"])


# ---------------------------------------------------------------------------
# Parameter construction (deterministic, xavier-style normal init)
# ---------------------------------------------------------------------------

def _xavier_normal(key, shape, fan_in, fan_out):
    std = (2.0 / (fan_in + fan_out)) ** 0.5
    return std * jax.random.normal(key, shape, dtype=jnp.float32)


def make_conv_params(key, cin, cout):
    kw, kb = jax.random.split(key)
    # torch Conv1d weight is (Cout, Cin, K); stored packed as (3*Cin, Cout):
    # rows [0:Cin] -> tap x[t-1], [Cin:2Cin] -> x[t], [2Cin:3Cin] -> x[t+1].
    w = _xavier_normal(kw, (3, cin, cout), fan_in=cin * 3, fan_out=cout * 3)
    w = w.reshape(3 * cin, cout)
    b = 0.01 * jax.random.normal(kb, (1, cout), dtype=jnp.float32)
    alpha = jnp.full((1, 1), 0.25, dtype=jnp.float32)   # nn.PReLU() default
    return {"w": w, "b": b, "alpha": alpha}


def make_linear_params(key, din, dout):
    kw, kb = jax.random.split(key)
    w = _xavier_normal(kw, (din, dout), fan_in=din, fan_out=dout)
    b = 0.01 * jax.random.normal(kb, (1, dout), dtype=jnp.float32)
    return w, b


def make_aeconv_params(key, n_times, n_feats, n_latent, n_classes):
    h1, h2, h3 = n_feats // 2, n_feats // 4, n_feats // 8
    keys = jax.random.split(key, 11)
    enc = [
        make_conv_params(keys[0], n_feats, h1),
        make_conv_params(keys[1], h1, h2),
        make_conv_params(keys[2], h2, h3),
        make_conv_params(keys[3], h3, n_latent),
    ]
    dec = [
        make_conv_params(keys[4], n_latent, h3),
        make_conv_params(keys[5], h3, h2),
        make_conv_params(keys[6], h2, h1),
        make_conv_params(keys[7], h1, n_feats),
    ]
    nlt = n_times * n_latent
    c1, c2 = nlt // 2, nlt // 4
    w1, b1 = make_linear_params(keys[8], nlt, c1)
    w2, b2 = make_linear_params(keys[9], c1, c2)
    w3, b3 = make_linear_params(keys[10], c2, n_classes)
    cls = {"w1": w1, "b1": b1, "w2": w2, "b2": b2, "w3": w3, "b3": b3}
    return {"enc": enc, "dec": dec, "cls": cls}


# ---------------------------------------------------------------------------
# Forward (mirrors AECONV.forward)
# ---------------------------------------------------------------------------

def aeconv_forward(params, x):
    """x: [B, n_times, n_feats] f32.

    Returns (dec_out [B, n_times, n_feats],
             class_  [B, n_classes],
             cls_last_layer_ [B, n_latent*n_times // 4],
             enc_out [B, n_latent, n_times])  -- PyTorch conventions.
    """
    x = x.astype(jnp.float32)
    prelu = (True, True, True, False)   # last conv of each stack has no PReLU

    # Encoder: fused 4-layer kernel; also emits the [B, n_latent, T] layout directly.
    enc_ntc, enc_out = conv_chain(x, params["enc"], prelu_flags=prelu,
                                  emit_transposed=True)

    # Classifier: h.contiguous().view(-1, n_latent*n_times) on the [B, n_latent, T] tensor.
    B = enc_out.shape[0]
    h_flat = enc_out.reshape(B, -1)
    class_, cls_last_layer_ = classifier(h_flat, params["cls"])

    # Decoder: fused 4-layer kernel; NTC output == torch output.transpose(1, 2).
    dec_out = conv_chain(enc_ntc, params["dec"], prelu_flags=prelu)

    return dec_out, class_, cls_last_layer_, enc_out


# ---------------------------------------------------------------------------
# Pure-JAX reference (same bf16-in / f32-accumulate math) for a sanity check
# ---------------------------------------------------------------------------

def _ref_conv1d(x, p, apply_prelu):
    B, T, _ = x.shape
    xp = jnp.pad(x, ((0, 0), (1, 1), (0, 0)))
    x3 = jnp.concatenate([xp[:, 0:T], xp[:, 1:T + 1], xp[:, 2:T + 2]], axis=-1)
    y = jnp.einsum("btk,kc->btc", x3.astype(jnp.bfloat16),
                   p["w"].astype(jnp.bfloat16),
                   preferred_element_type=jnp.float32) + p["b"]
    if apply_prelu:
        y = jnp.where(y > 0, y, p["alpha"][0, 0] * y)
    return y


def _ref_forward(params, x):
    h = x.astype(jnp.float32)
    for li, p in enumerate(params["enc"]):
        h = _ref_conv1d(h, p, li < 3)
    enc_out = jnp.transpose(h, (0, 2, 1))
    hf = enc_out.reshape(enc_out.shape[0], -1)
    c = params["cls"]
    h1 = hf @ c["w1"] + c["b1"]
    h2 = h1 @ c["w2"] + c["b2"]
    logits = h2 @ c["w3"] + c["b3"]
    cls_ = jax.nn.softmax(logits, axis=1)
    d = h
    for li, p in enumerate(params["dec"]):
        d = _ref_conv1d(d, p, li < 3)
    return d, cls_, h2, enc_out


# ---------------------------------------------------------------------------

if __name__ == "__main__":
    n_times, n_feats, n_latent, n_classes = 8, 32, 4, 2
    batch = 2

    key = jax.random.PRNGKey(0)
    kp, kx = jax.random.split(key)
    params = make_aeconv_params(kp, n_times, n_feats, n_latent, n_classes)
    x = jax.random.normal(kx, (batch, n_times, n_feats), dtype=jnp.float32)

    fwd = jax.jit(aeconv_forward)
    dec_out, class_, cls_last, enc_out = jax.block_until_ready(fwd(params, x))

    # Sanity check against a pure-JAX reference.
    r_dec, r_cls, r_last, r_enc = _ref_forward(params, x)
    assert dec_out.shape == (batch, n_times, n_feats)
    assert class_.shape == (batch, n_classes)
    assert cls_last.shape == (batch, (n_times * n_latent) // 4)
    assert enc_out.shape == (batch, n_latent, n_times)
    for a, b in ((dec_out, r_dec), (class_, r_cls), (cls_last, r_last), (enc_out, r_enc)):
        assert jnp.allclose(a, b, atol=2e-2, rtol=2e-2), "mismatch vs reference"

    print("KERNEL_OK")
</pallas_src>

<mosaic_0001>
module attributes {stable_mosaic.version = 11 : i64} {
  func.func @_conv_chain_kernel(%arg0: i32, %arg1: memref<1x8x32xf32, #tpu.memory_space<vmem>>, %arg2: memref<96x16xf32, #tpu.memory_space<vmem>>, %arg3: memref<1x16xf32, #tpu.memory_space<vmem>>, %arg4: memref<1x1xf32, #tpu.memory_space<vmem>>, %arg5: memref<48x8xf32, #tpu.memory_space<vmem>>, %arg6: memref<1x8xf32, #tpu.memory_space<vmem>>, %arg7: memref<1x1xf32, #tpu.memory_space<vmem>>, %arg8: memref<24x4xf32, #tpu.memory_space<vmem>>, %arg9: memref<1x4xf32, #tpu.memory_space<vmem>>, %arg10: memref<1x1xf32, #tpu.memory_space<vmem>>, %arg11: memref<12x4xf32, #tpu.memory_space<vmem>>, %arg12: memref<1x4xf32, #tpu.memory_space<vmem>>, %arg13: memref<1x1xf32, #tpu.memory_space<vmem>>, %arg14: memref<1x8x4xf32, #tpu.memory_space<vmem>>, %arg15: memref<1x4x8xf32, #tpu.memory_space<vmem>>, %arg16: memref<1x10x32xf32, #tpu.memory_space<vmem>>) attributes {dimension_semantics = [#tpu.dimension_semantics<parallel>], iteration_bounds = array<i64: 2>, scalar_prefetch = 0 : i64, scratch_operands = 1 : i64, tpu.core_type = #tpu.core_type<tc>, window_params = [{transform_indices = @transform_0, window_bounds = array<i64: 1, 8, 32>}, {pipeline_mode = #tpu.pipeline_mode<synchronous>, transform_indices = @transform_1, window_bounds = array<i64: 96, 16>}, {pipeline_mode = #tpu.pipeline_mode<synchronous>, transform_indices = @transform_2, window_bounds = array<i64: 1, 16>}, {pipeline_mode = #tpu.pipeline_mode<synchronous>, transform_indices = @transform_3, window_bounds = array<i64: 1, 1>}, {pipeline_mode = #tpu.pipeline_mode<synchronous>, transform_indices = @transform_4, window_bounds = array<i64: 48, 8>}, {pipeline_mode = #tpu.pipeline_mode<synchronous>, transform_indices = @transform_5, window_bounds = array<i64: 1, 8>}, {pipeline_mode = #tpu.pipeline_mode<synchronous>, transform_indices = @transform_6, window_bounds = array<i64: 1, 1>}, {pipeline_mode = #tpu.pipeline_mode<synchronous>, transform_indices = @transform_7, window_bounds = array<i64: 24, 4>}, {pipeline_mode = #tpu.pipeline_mode<synchronous>, transform_indices = @transform_8, window_bounds = array<i64: 1, 4>}, {pipeline_mode = #tpu.pipeline_mode<synchronous>, transform_indices = @transform_9, window_bounds = array<i64: 1, 1>}, {pipeline_mode = #tpu.pipeline_mode<synchronous>, transform_indices = @transform_10, window_bounds = array<i64: 12, 4>}, {pipeline_mode = #tpu.pipeline_mode<synchronous>, transform_indices = @transform_11, window_bounds = array<i64: 1, 4>}, {pipeline_mode = #tpu.pipeline_mode<synchronous>, transform_indices = @transform_12, window_bounds = array<i64: 1, 1>}, {transform_indices = @transform_13, window_bounds = array<i64: 1, 8, 4>}, {transform_indices = @transform_14, window_bounds = array<i64: 1, 4, 8>}]} {
    %cst = arith.constant 0.000000e+00 : f32
    %0 = vector.broadcast %cst : f32 to vector<1x1x32xf32>
    %c0 = arith.constant 0 : index
    %c0_0 = arith.constant 0 : index
    %c0_1 = arith.constant 0 : index
    %1 = vector.load %arg16[%c0, %c0_0, %c0_1] : memref<1x10x32xf32, #tpu.memory_space<vmem>>, vector<1x1x32xf32>
    tpu.vector_store %arg16[%c0, %c0_0, %c0_1], %0 {strides = array<i32>} : memref<1x10x32xf32, #tpu.memory_space<vmem>>, vector<1x1x32xf32>,
    %c0_2 = arith.constant 0 : index
    %c9 = arith.constant 9 : index
    %c0_3 = arith.constant 0 : index
    %2 = vector.load %arg16[%c0_2, %c9, %c0_3] : memref<1x10x32xf32, #tpu.memory_space<vmem>>, vector<1x1x32xf32>
    tpu.vector_store %arg16[%c0_2, %c9, %c0_3], %0 {strides = array<i32>} : memref<1x10x32xf32, #tpu.memory_space<vmem>>, vector<1x1x32xf32>,
    %c0_4 = arith.constant 0 : index
    %c0_5 = arith.constant 0 : index
    %c0_6 = arith.constant 0 : index
    %3 = vector.load %arg1[%c0_4, %c0_5, %c0_6] : memref<1x8x32xf32, #tpu.memory_space<vmem>>, vector<1x8x32xf32>
    %c0_7 = arith.constant 0 : index
    %c1 = arith.constant 1 : index
    %c0_8 = arith.constant 0 : index
    %4 = vector.load %arg16[%c0_7, %c1, %c0_8] : memref<1x10x32xf32, #tpu.memory_space<vmem>>, vector<1x8x32xf32>
    tpu.vector_store %arg16[%c0_7, %c1, %c0_8], %3 {strides = array<i32>} : memref<1x10x32xf32, #tpu.memory_space<vmem>>, vector<1x8x32xf32>,
    %c0_9 = arith.constant 0 : index
    %c0_10 = arith.constant 0 : index
    %c0_11 = arith.constant 0 : index
    %5 = vector.load %arg16[%c0_9, %c0_10, %c0_11] : memref<1x10x32xf32, #tpu.memory_space<vmem>>, vector<1x8x32xf32>
    %c0_12 = arith.constant 0 : index
    %c1_13 = arith.constant 1 : index
    %c0_14 = arith.constant 0 : index
    %6 = vector.load %arg16[%c0_12, %c1_13, %c0_14] : memref<1x10x32xf32, #tpu.memory_space<vmem>>, vector<1x8x32xf32>
    %c0_15 = arith.constant 0 : index
    %c2 = arith.constant 2 : index
    %c0_16 = arith.constant 0 : index
    %7 = vector.load %arg16[%c0_15, %c2, %c0_16] : memref<1x10x32xf32, #tpu.memory_space<vmem>>, vector<1x8x32xf32>
    %8 = tpu.concatenate %5, %6, %7 in 2 : vector<1x8x32xf32>, vector<1x8x32xf32>, vector<1x8x32xf32> -> vector<1x8x96xf32>
    %9 = vector.shape_cast %8 : vector<1x8x96xf32> to vector<8x96xf32>
    %10 = arith.truncf %9 : vector<8x96xf32> to vector<8x96xbf16>
    %c0_17 = arith.constant 0 : index
    %c0_18 = arith.constant 0 : index
    %11 = vector.load %arg2[%c0_17, %c0_18] : memref<96x16xf32, #tpu.memory_space<vmem>>, vector<96x16xf32>
    %12 = arith.truncf %11 : vector<96x16xf32> to vector<96x16xbf16>
    %cst_19 = arith.constant dense<0.000000e+00> : vector<8x16xf32>
    %13 = tpu.matmul %10, %12, %cst_19 {dimension_numbers = #tpu.dot_dimension_numbers<[1], [0], [0], [1], [0, 0, 1, 1], [], []>} : vector<8x96xbf16>, vector<96x16xbf16>, vector<8x16xf32> -> vector<8x16xf32>
    %14 = vector.shape_cast %13 : vector<8x16xf32> to vector<1x8x16xf32>
    %c0_20 = arith.constant 0 : index
    %c0_21 = arith.constant 0 : index
    %15 = vector.load %arg3[%c0_20, %c0_21] : memref<1x16xf32, #tpu.memory_space<vmem>>, vector<1x16xf32>
    %16 = vector.shape_cast %15 : vector<1x16xf32> to vector<1x1x16xf32>
    %17 = vector.broadcast %16 : vector<1x1x16xf32> to vector<1x8x16xf32>
    %18 = arith.addf %14, %17 : vector<1x8x16xf32>
    %cst_22 = arith.constant 0.000000e+00 : f32
    %19 = vector.broadcast %cst_22 : f32 to vector<1x8x16xf32>
    %20 = arith.cmpf ogt, %18, %19 : vector<1x8x16xf32>
    %c0_23 = arith.constant 0 : index
    %c0_24 = arith.constant 0 : index
    %21 = vector.load %arg4[%c0_23, %c0_24] : memref<1x1xf32, #tpu.memory_space<vmem>>, vector<1x1xf32>
    %22 = vector.shape_cast %21 : vector<1x1xf32> to vector<1x1x1xf32>
    %23 = vector.broadcast %22 : vector<1x1x1xf32> to vector<1x8x16xf32>
    %24 = arith.mulf %23, %18 : vector<1x8x16xf32>
    %25 = arith.select %20, %18, %24 : vector<1x8x16xi1>, vector<1x8x16xf32>
    %c0_25 = arith.constant 0 : index
    %c1_26 = arith.constant 1 : index
    %c0_27 = arith.constant 0 : index
    %26 = vector.load %arg16[%c0_25, %c1_26, %c0_27] : memref<1x10x32xf32, #tpu.memory_space<vmem>>, vector<1x8x16xf32>
    tpu.vector_store %arg16[%c0_25, %c1_26, %c0_27], %25 {strides = array<i32>} : memref<1x10x32xf32, #tpu.memory_space<vmem>>, vector<1x8x16xf32>,
    %c0_28 = arith.constant 0 : index
    %c0_29 = arith.constant 0 : index
    %c0_30 = arith.constant 0 : index
    %27 = vector.load %arg16[%c0_28, %c0_29, %c0_30] : memref<1x10x32xf32, #tpu.memory_space<vmem>>, vector<1x8x16xf32>
    %c0_31 = arith.constant 0 : index
    %c1_32 = arith.constant 1 : index
    %c0_33 = arith.constant 0 : index
    %28 = vector.load %arg16[%c0_31, %c1_32, %c0_33] : memref<1x10x32xf32, #tpu.memory_space<vmem>>, vector<1x8x16xf32>
    %c0_34 = arith.constant 0 : index
    %c2_35 = arith.constant 2 : index
    %c0_36 = arith.constant 0 : index
    %29 = vector.load %arg16[%c0_34, %c2_35, %c0_36] : memref<1x10x32xf32, #tpu.memory_space<vmem>>, vector<1x8x16xf32>
    %30 = tpu.concatenate %27, %28, %29 in 2 : vector<1x8x16xf32>, vector<1x8x16xf32>, vector<1x8x16xf32> -> vector<1x8x48xf32>
    %31 = vector.shape_cast %30 : vector<1x8x48xf32> to vector<8x48xf32>
    %32 = arith.truncf %31 : vector<8x48xf32> to vector<8x48xbf16>
    %c0_37 = arith.constant 0 : index
    %c0_38 = arith.constant 0 : index
    %33 = vector.load %arg5[%c0_37, %c0_38] : memref<48x8xf32, #tpu.memory_space<vmem>>, vector<48x8xf32>
    %34 = arith.truncf %33 : vector<48x8xf32> to vector<48x8xbf16>
    %cst_39 = arith.constant dense<0.000000e+00> : vector<8x8xf32>
    %35 = tpu.matmul %32, %34, %cst_39 {dimension_numbers = #tpu.dot_dimension_numbers<[1], [0], [0], [1], [0, 0, 1, 1], [], []>} : vector<8x48xbf16>, vector<48x8xbf16>, vector<8x8xf32> -> vector<8x8xf32>
    %36 = vector.shape_cast %35 : vector<8x8xf32> to vector<1x8x8xf32>
    %c0_40 = arith.constant 0 : index
    %c0_41 = arith.constant 0 : index
    %37 = vector.load %arg6[%c0_40, %c0_41] : memref<1x8xf32, #tpu.memory_space<vmem>>, vector<1x8xf32>
    %38 = vector.shape_cast %37 : vector<1x8xf32> to vector<1x1x8xf32>
    %39 = vector.broadcast %38 : vector<1x1x8xf32> to vector<1x8x8xf32>
    %40 = arith.addf %36, %39 : vector<1x8x8xf32>
    %cst_42 = arith.constant 0.000000e+00 : f32
    %41 = vector.broadcast %cst_42 : f32 to vector<1x8x8xf32>
    %42 = arith.cmpf ogt, %40, %41 : vector<1x8x8xf32>
    %c0_43 = arith.constant 0 : index
    %c0_44 = arith.constant 0 : index
    %43 = vector.load %arg7[%c0_43, %c0_44] : memref<1x1xf32, #tpu.memory_space<vmem>>, vector<1x1xf32>
    %44 = vector.shape_cast %43 : vector<1x1xf32> to vector<1x1x1xf32>
    %45 = vector.broadcast %44 : vector<1x1x1xf32> to vector<1x8x8xf32>
    %46 = arith.mulf %45, %40 : vector<1x8x8xf32>
    %47 = arith.select %42, %40, %46 : vector<1x8x8xi1>, vector<1x8x8xf32>
    %c0_45 = arith.constant 0 : index
    %c1_46 = arith.constant 1 : index
    %c0_47 = arith.constant 0 : index
    %48 = vector.load %arg16[%c0_45, %c1_46, %c0_47] : memref<1x10x32xf32, #tpu.memory_space<vmem>>, vector<1x8x8xf32>
    tpu.vector_store %arg16[%c0_45, %c1_46, %c0_47], %47 {strides = array<i32>} : memref<1x10x32xf32, #tpu.memory_space<vmem>>, vector<1x8x8xf32>,
    %c0_48 = arith.constant 0 : index
    %c0_49 = arith.constant 0 : index
    %c0_50 = arith.constant 0 : index
    %49 = vector.load %arg16[%c0_48, %c0_49, %c0_50] : memref<1x10x32xf32, #tpu.memory_space<vmem>>, vector<1x8x8xf32>
    %c0_51 = arith.constant 0 : index
    %c1_52 = arith.constant 1 : index
    %c0_53 = arith.constant 0 : index
    %50 = vector.load %arg16[%c0_51, %c1_52, %c0_53] : memref<1x10x32xf32, #tpu.memory_space<vmem>>, vector<1x8x8xf32>
    %c0_54 = arith.constant 0 : index
    %c2_55 = arith.constant 2 : index
    %c0_56 = arith.constant 0 : index
    %51 = vector.load %arg16[%c0_54, %c2_55, %c0_56] : memref<1x10x32xf32, #tpu.memory_space<vmem>>, vector<1x8x8xf32>
    %52 = tpu.concatenate %49, %50, %51 in 2 : vector<1x8x8xf32>, vector<1x8x8xf32>, vector<1x8x8xf32> -> vector<1x8x24xf32>
    %53 = vector.shape_cast %52 : vector<1x8x24xf32> to vector<8x24xf32>
    %54 = arith.truncf %53 : vector<8x24xf32> to vector<8x24xbf16>
    %c0_57 = arith.constant 0 : index
    %c0_58 = arith.constant 0 : index
    %55 = vector.load %arg8[%c0_57, %c0_58] : memref<24x4xf32, #tpu.memory_space<vmem>>, vector<24x4xf32>
    %56 = arith.truncf %55 : vector<24x4xf32> to vector<24x4xbf16>
    %cst_59 = arith.constant dense<0.000000e+00> : vector<8x4xf32>
    %57 = tpu.matmul %54, %56, %cst_59 {dimension_numbers = #tpu.dot_dimension_numbers<[1], [0], [0], [1], [0, 0, 1, 1], [], []>} : vector<8x24xbf16>, vector<24x4xbf16>, vector<8x4xf32> -> vector<8x4xf32>
    %58 = vector.shape_cast %57 : vector<8x4xf32> to vector<1x8x4xf32>
    %c0_60 = arith.constant 0 : index
    %c0_61 = arith.constant 0 : index
    %59 = vector.load %arg9[%c0_60, %c0_61] : memref<1x4xf32, #tpu.memory_space<vmem>>, vector<1x4xf32>
    %60 = vector.shape_cast %59 : vector<1x4xf32> to vector<1x1x4xf32>
    %61 = vector.broadcast %60 : vector<1x1x4xf32> to vector<1x8x4xf32>
    %62 = arith.addf %58, %61 : vector<1x8x4xf32>
    %cst_62 = arith.constant 0.000000e+00 : f32
    %63 = vector.broadcast %cst_62 : f32 to vector<1x8x4xf32>
    %64 = arith.cmpf ogt, %62, %63 : vector<1x8x4xf32>
    %c0_63 = arith.constant 0 : index
    %c0_64 = arith.constant 0 : index
    %65 = vector.load %arg10[%c0_63, %c0_64] : memref<1x1xf32, #tpu.memory_space<vmem>>, vector<1x1xf32>
    %66 = vector.shape_cast %65 : vector<1x1xf32> to vector<1x1x1xf32>
    %67 = vector.broadcast %66 : vector<1x1x1xf32> to vector<1x8x4xf32>
    %68 = arith.mulf %67, %62 : vector<1x8x4xf32>
    %69 = arith.select %64, %62, %68 : vector<1x8x4xi1>, vector<1x8x4xf32>
    %c0_65 = arith.constant 0 : index
    %c1_66 = arith.constant 1 : index
    %c0_67 = arith.constant 0 : index
    %70 = vector.load %arg16[%c0_65, %c1_66, %c0_67] : memref<1x10x32xf32, #tpu.memory_space<vmem>>, vector<1x8x4xf32>
    tpu.vector_store %arg16[%c0_65, %c1_66, %c0_67], %69 {strides = array<i32>} : memref<1x10x32xf32, #tpu.memory_space<vmem>>, vector<1x8x4xf32>,
    %c0_68 = arith.constant 0 : index
    %c0_69 = arith.constant 0 : index
    %c0_70 = arith.constant 0 : index
    %71 = vector.load %arg16[%c0_68, %c0_69, %c0_70] : memref<1x10x32xf32, #tpu.memory_space<vmem>>, vector<1x8x4xf32>
    %c0_71 = arith.constant 0 : index
    %c1_72 = arith.constant 1 : index
    %c0_73 = arith.constant 0 : index
    %72 = vector.load %arg16[%c0_71, %c1_72, %c0_73] : memref<1x10x32xf32, #tpu.memory_space<vmem>>, vector<1x8x4xf32>
    %c0_74 = arith.constant 0 : index
    %c2_75 = arith.constant 2 : index
    %c0_76 = arith.constant 0 : index
    %73 = vector.load %arg16[%c0_74, %c2_75, %c0_76] : memref<1x10x32xf32, #tpu.memory_space<vmem>>, vector<1x8x4xf32>
    %74 = tpu.concatenate %71, %72, %73 in 2 : vector<1x8x4xf32>, vector<1x8x4xf32>, vector<1x8x4xf32> -> vector<1x8x12xf32>
    %75 = vector.shape_cast %74 : vector<1x8x12xf32> to vector<8x12xf32>
    %76 = arith.truncf %75 : vector<8x12xf32> to vector<8x12xbf16>
    %c0_77 = arith.constant 0 : index
    %c0_78 = arith.constant 0 : index
    %77 = vector.load %arg11[%c0_77, %c0_78] : memref<12x4xf32, #tpu.memory_space<vmem>>, vector<12x4xf32>
    %78 = arith.truncf %77 : vector<12x4xf32> to vector<12x4xbf16>
    %cst_79 = arith.constant dense<0.000000e+00> : vector<8x4xf32>
    %79 = tpu.matmul %76, %78, %cst_79 {dimension_numbers = #tpu.dot_dimension_numbers<[1], [0], [0], [1], [0, 0, 1, 1], [], []>} : vector<8x12xbf16>, vector<12x4xbf16>, vector<8x4xf32> -> vector<8x4xf32>
    %80 = vector.shape_cast %79 : vector<8x4xf32> to vector<1x8x4xf32>
    %c0_80 = arith.constant 0 : index
    %c0_81 = arith.constant 0 : index
    %81 = vector.load %arg12[%c0_80, %c0_81] : memref<1x4xf32, #tpu.memory_space<vmem>>, vector<1x4xf32>
    %82 = vector.shape_cast %81 : vector<1x4xf32> to vector<1x1x4xf32>
    %83 = vector.broadcast %82 : vector<1x1x4xf32> to vector<1x8x4xf32>
    %84 = arith.addf %80, %83 : vector<1x8x4xf32>
    %c0_82 = arith.constant 0 : index
    %c0_83 = arith.constant 0 : index
    %c0_84 = arith.constant 0 : index
    %85 = vector.load %arg14[%c0_82, %c0_83, %c0_84] : memref<1x8x4xf32, #tpu.memory_space<vmem>>, vector<1x8x4xf32>
    tpu.vector_store %arg14[%c0_82, %c0_83, %c0_84], %84 {strides = array<i32>} : memref<1x8x4xf32, #tpu.memory_space<vmem>>, vector<1x8x4xf32>,
    %86 = vector.shape_cast %84 : vector<1x8x4xf32> to vector<8x4xf32>
    %87 = tpu.transpose %86, [1, 0] : vector<8x4xf32> -> vector<4x8xf32>
    %c0_85 = arith.constant 0 : index
    %c0_86 = arith.constant 0 : index
    %c0_87 = arith.constant 0 : index
    %88 = vector.load %arg15[%c0_85, %c0_86, %c0_87] : memref<1x4x8xf32, #tpu.memory_space<vmem>>, vector<1x4x8xf32>
    %89 = vector.shape_cast %88 : vector<1x4x8xf32> to vector<4x8xf32>
    %90 = vector.shape_cast %87 : vector<4x8xf32> to vector<1x4x8xf32>
    tpu.vector_store %arg15[%c0_85, %c0_86, %c0_87], %90 {strides = array<i32>} : memref<1x4x8xf32, #tpu.memory_space<vmem>>, vector<1x4x8xf32>,
    return
  }
  func.func @transform_0(%arg0: i32) -> (i32, i32, i32) {
    %c0_i32 = arith.constant 0 : i32
    %c0_i32_0 = arith.constant 0 : i32
    %c0_i32_1 = arith.constant 0 : i32
    return %arg0, %c0_i32, %c0_i32_0 : i32, i32, i32
  }
  func.func @transform_1(%arg0: i32) -> (i32, i32) {
    %c0_i32 = arith.constant 0 : i32
    %c0_i32_0 = arith.constant 0 : i32
    %c0_i32_1 = arith.constant 0 : i32
    return %c0_i32, %c0_i32_0 : i32, i32
  }
  func.func @transform_2(%arg0: i32) -> (i32, i32) {
    %c0_i32 = arith.constant 0 : i32
    %c0_i32_0 = arith.constant 0 : i32
    %c0_i32_1 = arith.constant 0 : i32
    return %c0_i32, %c0_i32_0 : i32, i32
  }
  func.func @transform_3(%arg0: i32) -> (i32, i32) {
    %c0_i32 = arith.constant 0 : i32
    %c0_i32_0 = arith.constant 0 : i32
    %c0_i32_1 = arith.constant 0 : i32
    return %c0_i32, %c0_i32_0 : i32, i32
  }
  func.func @transform_4(%arg0: i32) -> (i32, i32) {
    %c0_i32 = arith.constant 0 : i32
    %c0_i32_0 = arith.constant 0 : i32
    %c0_i32_1 = arith.constant 0 : i32
    return %c0_i32, %c0_i32_0 : i32, i32
  }
  func.func @transform_5(%arg0: i32) -> (i32, i32) {
    %c0_i32 = arith.constant 0 : i32
    %c0_i32_0 = arith.constant 0 : i32
    %c0_i32_1 = arith.constant 0 : i32
    return %c0_i32, %c0_i32_0 : i32, i32
  }
  func.func @transform_6(%arg0: i32) -> (i32, i32) {
    %c0_i32 = arith.constant 0 : i32
    %c0_i32_0 = arith.constant 0 : i32
    %c0_i32_1 = arith.constant 0 : i32
    return %c0_i32, %c0_i32_0 : i32, i32
  }
  func.func @transform_7(%arg0: i32) -> (i32, i32) {
    %c0_i32 = arith.constant 0 : i32
    %c0_i32_0 = arith.constant 0 : i32
    %c0_i32_1 = arith.constant 0 : i32
    return %c0_i32, %c0_i32_0 : i32, i32
  }
  func.func @transform_8(%arg0: i32) -> (i32, i32) {
    %c0_i32 = arith.constant 0 : i32
    %c0_i32_0 = arith.constant 0 : i32
    %c0_i32_1 = arith.constant 0 : i32
    return %c0_i32, %c0_i32_0 : i32, i32
  }
  func.func @transform_9(%arg0: i32) -> (i32, i32) {
    %c0_i32 = arith.constant 0 : i32
    %c0_i32_0 = arith.constant 0 : i32
    %c0_i32_1 = arith.constant 0 : i32
    return %c0_i32, %c0_i32_0 : i32, i32
  }
  func.func @transform_10(%arg0: i32) -> (i32, i32) {
    %c0_i32 = arith.constant 0 : i32
    %c0_i32_0 = arith.constant 0 : i32
    %c0_i32_1 = arith.constant 0 : i32
    return %c0_i32, %c0_i32_0 : i32, i32
  }
  func.func @transform_11(%arg0: i32) -> (i32, i32) {
    %c0_i32 = arith.constant 0 : i32
    %c0_i32_0 = arith.constant 0 : i32
    %c0_i32_1 = arith.constant 0 : i32
    return %c0_i32, %c0_i32_0 : i32, i32
  }
  func.func @transform_12(%arg0: i32) -> (i32, i32) {
    %c0_i32 = arith.constant 0 : i32
    %c0_i32_0 = arith.constant 0 : i32
    %c0_i32_1 = arith.constant 0 : i32
    return %c0_i32, %c0_i32_0 : i32, i32
  }
  func.func @transform_13(%arg0: i32) -> (i32, i32, i32) {
    %c0_i32 = arith.constant 0 : i32
    %c0_i32_0 = arith.constant 0 : i32
    %c0_i32_1 = arith.constant 0 : i32
    return %arg0, %c0_i32, %c0_i32_0 : i32, i32, i32
  }
  func.func @transform_14(%arg0: i32) -> (i32, i32, i32) {
    %c0_i32 = arith.constant 0 : i32
    %c0_i32_0 = arith.constant 0 : i32
    %c0_i32_1 = arith.constant 0 : i32
    return %arg0, %c0_i32, %c0_i32_0 : i32, i32, i32
  }
}

module attributes {stable_mosaic.version = 11 : i64} {
  func.func @_classifier_kernel(%arg0: memref<2x32xf32, #tpu.memory_space<vmem>>, %arg1: memref<32x16xf32, #tpu.memory_space<vmem>>, %arg2: memref<1x16xf32, #tpu.memory_space<vmem>>, %arg3: memref<16x8xf32, #tpu.memory_space<vmem>>, %arg4: memref<1x8xf32, #tpu.memory_space<vmem>>, %arg5: memref<8x2xf32, #tpu.memory_space<vmem>>, %arg6: memref<1x2xf32, #tpu.memory_space<vmem>>, %arg7: memref<2x2xf32, #tpu.memory_space<vmem>>, %arg8: memref<2x8xf32, #tpu.memory_space<vmem>>) attributes {dimension_semantics = [], scalar_prefetch = 0 : i64, scratch_operands = 0 : i64, tpu.core_type = #tpu.core_type<tc>} {
    %c0 = arith.constant 0 : index
    %c0_0 = arith.constant 0 : index
    %0 = vector.load %arg0[%c0, %c0_0] : memref<2x32xf32, #tpu.memory_space<vmem>>, vector<2x32xf32>
    %c0_1 = arith.constant 0 : index
    %c0_2 = arith.constant 0 : index
    %1 = vector.load %arg1[%c0_1, %c0_2] : memref<32x16xf32, #tpu.memory_space<vmem>>, vector<32x16xf32>
    %cst = arith.constant dense<0.000000e+00> : vector<2x16xf32>
    %2 = tpu.matmul %0, %1, %cst {dimension_numbers = #tpu.dot_dimension_numbers<[1], [0], [0], [1], [0, 0, 1, 1], [], []>} : vector<2x32xf32>, vector<32x16xf32>, vector<2x16xf32> -> vector<2x16xf32>
    %c0_3 = arith.constant 0 : index
    %c0_4 = arith.constant 0 : index
    %3 = vector.load %arg2[%c0_3, %c0_4] : memref<1x16xf32, #tpu.memory_space<vmem>>, vector<1x16xf32>
    %4 = vector.broadcast %3 : vector<1x16xf32> to vector<2x16xf32>
    %5 = arith.addf %2, %4 : vector<2x16xf32>
    %c0_5 = arith.constant 0 : index
    %c0_6 = arith.constant 0 : index
    %6 = vector.load %arg3[%c0_5, %c0_6] : memref<16x8xf32, #tpu.memory_space<vmem>>, vector<16x8xf32>
    %cst_7 = arith.constant dense<0.000000e+00> : vector<2x8xf32>
    %7 = tpu.matmul %5, %6, %cst_7 {dimension_numbers = #tpu.dot_dimension_numbers<[1], [0], [0], [1], [0, 0, 1, 1], [], []>} : vector<2x16xf32>, vector<16x8xf32>, vector<2x8xf32> -> vector<2x8xf32>
    %c0_8 = arith.constant 0 : index
    %c0_9 = arith.constant 0 : index
    %8 = vector.load %arg4[%c0_8, %c0_9] : memref<1x8xf32, #tpu.memory_space<vmem>>, vector<1x8xf32>
    %9 = vector.broadcast %8 : vector<1x8xf32> to vector<2x8xf32>
    %10 = arith.addf %7, %9 : vector<2x8xf32>
    %c0_10 = arith.constant 0 : index
    %c0_11 = arith.constant 0 : index
    %11 = vector.load %arg5[%c0_10, %c0_11] : memref<8x2xf32, #tpu.memory_space<vmem>>, vector<8x2xf32>
    %cst_12 = arith.constant dense<0.000000e+00> : vector<2x2xf32>
    %12 = tpu.matmul %10, %11, %cst_12 {dimension_numbers = #tpu.dot_dimension_numbers<[1], [0], [0], [1], [0, 0, 1, 1], [], []>} : vector<2x8xf32>, vector<8x2xf32>, vector<2x2xf32> -> vector<2x2xf32>
    %c0_13 = arith.constant 0 : index
    %c0_14 = arith.constant 0 : index
    %13 = vector.load %arg6[%c0_13, %c0_14] : memref<1x2xf32, #tpu.memory_space<vmem>>, vector<1x2xf32>
    %14 = vector.broadcast %13 : vector<1x2xf32> to vector<2x2xf32>
    %15 = arith.addf %12, %14 : vector<2x2xf32>
    %cst_15 = arith.constant dense<0xFF800000> : vector<2xf32>
    %16 = vector.multi_reduction <maximumf>, %15, %cst_15 [1] : vector<2x2xf32> to vector<2xf32>
    %17 = vector.shape_cast %16 : vector<2xf32> to vector<2x1xf32>
    %18 = vector.broadcast %17 : vector<2x1xf32> to vector<2x2xf32>
    %19 = arith.subf %15, %18 : vector<2x2xf32>
    %20 = math.exp %19 : vector<2x2xf32>
    %cst_16 = arith.constant dense<0.000000e+00> : vector<2xf32>
    %21 = vector.multi_reduction <add>, %20, %cst_16 [1] : vector<2x2xf32> to vector<2xf32>
    %22 = vector.shape_cast %21 : vector<2xf32> to vector<2x1xf32>
    %23 = vector.broadcast %22 : vector<2x1xf32> to vector<2x2xf32>
    %24 = arith.divf %20, %23 : vector<2x2xf32>
    %c0_17 = arith.constant 0 : index
    %c0_18 = arith.constant 0 : index
    %25 = vector.load %arg7[%c0_17, %c0_18] : memref<2x2xf32, #tpu.memory_space<vmem>>, vector<2x2xf32>
    tpu.vector_store %arg7[%c0_17, %c0_18], %24 {strides = array<i32>} : memref<2x2xf32, #tpu.memory_space<vmem>>, vector<2x2xf32>,
    %c0_19 = arith.constant 0 : index
    %c0_20 = arith.constant 0 : index
    %26 = vector.load %arg8[%c0_19, %c0_20] : memref<2x8xf32, #tpu.memory_space<vmem>>, vector<2x8xf32>
    tpu.vector_store %arg8[%c0_19, %c0_20], %10 {strides = array<i32>} : memref<2x8xf32, #tpu.memory_space<vmem>>, vector<2x8xf32>,
    return
  }
}

module attributes {stable_mosaic.version = 11 : i64} {
  func.func @_conv_chain_kernel(%arg0: i32, %arg1: memref<1x8x4xf32, #tpu.memory_space<vmem>>, %arg2: memref<12x4xf32, #tpu.memory_space<vmem>>, %arg3: memref<1x4xf32, #tpu.memory_space<vmem>>, %arg4: memref<1x1xf32, #tpu.memory_space<vmem>>, %arg5: memref<12x8xf32, #tpu.memory_space<vmem>>, %arg6: memref<1x8xf32, #tpu.memory_space<vmem>>, %arg7: memref<1x1xf32, #tpu.memory_space<vmem>>, %arg8: memref<24x16xf32, #tpu.memory_space<vmem>>, %arg9: memref<1x16xf32, #tpu.memory_space<vmem>>, %arg10: memref<1x1xf32, #tpu.memory_space<vmem>>, %arg11: memref<48x32xf32, #tpu.memory_space<vmem>>, %arg12: memref<1x32xf32, #tpu.memory_space<vmem>>, %arg13: memref<1x1xf32, #tpu.memory_space<vmem>>, %arg14: memref<1x8x32xf32, #tpu.memory_space<vmem>>, %arg15: memref<1x10x32xf32, #tpu.memory_space<vmem>>) attributes {dimension_semantics = [#tpu.dimension_semantics<parallel>], iteration_bounds = array<i64: 2>, scalar_prefetch = 0 : i64, scratch_operands = 1 : i64, tpu.core_type = #tpu.core_type<tc>, window_params = [{transform_indices = @transform_0, window_bounds = array<i64: 1, 8, 4>}, {pipeline_mode = #tpu.pipeline_mode<synchronous>, transform_indices = @transform_1, window_bounds = array<i64: 12, 4>}, {pipeline_mode = #tpu.pipeline_mode<synchronous>, transform_indices = @transform_2, window_bounds = array<i64: 1, 4>}, {pipeline_mode = #tpu.pipeline_mode<synchronous>, transform_indices = @transform_3, window_bounds = array<i64: 1, 1>}, {pipeline_mode = #tpu.pipeline_mode<synchronous>, transform_indices = @transform_4, window_bounds = array<i64: 12, 8>}, {pipeline_mode = #tpu.pipeline_mode<synchronous>, transform_indices = @transform_5, window_bounds = array<i64: 1, 8>}, {pipeline_mode = #tpu.pipeline_mode<synchronous>, transform_indices = @transform_6, window_bounds = array<i64: 1, 1>}, {pipeline_mode = #tpu.pipeline_mode<synchronous>, transform_indices = @transform_7, window_bounds = array<i64: 24, 16>}, {pipeline_mode = #tpu.pipeline_mode<synchronous>, transform_indices = @transform_8, window_bounds = array<i64: 1, 16>}, {pipeline_mode = #tpu.pipeline_mode<synchronous>, transform_indices = @transform_9, window_bounds = array<i64: 1, 1>}, {pipeline_mode = #tpu.pipeline_mode<synchronous>, transform_indices = @transform_10, window_bounds = array<i64: 48, 32>}, {pipeline_mode = #tpu.pipeline_mode<synchronous>, transform_indices = @transform_11, window_bounds = array<i64: 1, 32>}, {pipeline_mode = #tpu.pipeline_mode<synchronous>, transform_indices = @transform_12, window_bounds = array<i64: 1, 1>}, {transform_indices = @transform_13, window_bounds = array<i64: 1, 8, 32>}]} {
    %cst = arith.constant 0.000000e+00 : f32
    %0 = vector.broadcast %cst : f32 to vector<1x1x32xf32>
    %c0 = arith.constant 0 : index
    %c0_0 = arith.constant 0 : index
    %c0_1 = arith.constant 0 : index
    %1 = vector.load %arg15[%c0, %c0_0, %c0_1] : memref<1x10x32xf32, #tpu.memory_space<vmem>>, vector<1x1x32xf32>
    tpu.vector_store %arg15[%c0, %c0_0, %c0_1], %0 {strides = array<i32>} : memref<1x10x32xf32, #tpu.memory_space<vmem>>, vector<1x1x32xf32>,
    %c0_2 = arith.constant 0 : index
    %c9 = arith.constant 9 : index
    %c0_3 = arith.constant 0 : index
    %2 = vector.load %arg15[%c0_2, %c9, %c0_3] : memref<1x10x32xf32, #tpu.memory_space<vmem>>, vector<1x1x32xf32>
    tpu.vector_store %arg15[%c0_2, %c9, %c0_3], %0 {strides = array<i32>} : memref<1x10x32xf32, #tpu.memory_space<vmem>>, vector<1x1x32xf32>,
    %c0_4 = arith.constant 0 : index
    %c0_5 = arith.constant 0 : index
    %c0_6 = arith.constant 0 : index
    %3 = vector.load %arg1[%c0_4, %c0_5, %c0_6] : memref<1x8x4xf32, #tpu.memory_space<vmem>>, vector<1x8x4xf32>
    %c0_7 = arith.constant 0 : index
    %c1 = arith.constant 1 : index
    %c0_8 = arith.constant 0 : index
    %4 = vector.load %arg15[%c0_7, %c1, %c0_8] : memref<1x10x32xf32, #tpu.memory_space<vmem>>, vector<1x8x4xf32>
    tpu.vector_store %arg15[%c0_7, %c1, %c0_8], %3 {strides = array<i32>} : memref<1x10x32xf32, #tpu.memory_space<vmem>>, vector<1x8x4xf32>,
    %c0_9 = arith.constant 0 : index
    %c0_10 = arith.constant 0 : index
    %c0_11 = arith.constant 0 : index
    %5 = vector.load %arg15[%c0_9, %c0_10, %c0_11] : memref<1x10x32xf32, #tpu.memory_space<vmem>>, vector<1x8x4xf32>
    %c0_12 = arith.constant 0 : index
    %c1_13 = arith.constant 1 : index
    %c0_14 = arith.constant 0 : index
    %6 = vector.load %arg15[%c0_12, %c1_13, %c0_14] : memref<1x10x32xf32, #tpu.memory_space<vmem>>, vector<1x8x4xf32>
    %c0_15 = arith.constant 0 : index
    %c2 = arith.constant 2 : index
    %c0_16 = arith.constant 0 : index
    %7 = vector.load %arg15[%c0_15, %c2, %c0_16] : memref<1x10x32xf32, #tpu.memory_space<vmem>>, vector<1x8x4xf32>
    %8 = tpu.concatenate %5, %6, %7 in 2 : vector<1x8x4xf32>, vector<1x8x4xf32>, vector<1x8x4xf32> -> vector<1x8x12xf32>
    %9 = vector.shape_cast %8 : vector<1x8x12xf32> to vector<8x12xf32>
    %10 = arith.truncf %9 : vector<8x12xf32> to vector<8x12xbf16>
    %c0_17 = arith.constant 0 : index
    %c0_18 = arith.constant 0 : index
    %11 = vector.load %arg2[%c0_17, %c0_18] : memref<12x4xf32, #tpu.memory_space<vmem>>, vector<12x4xf32>
    %12 = arith.truncf %11 : vector<12x4xf32> to vector<12x4xbf16>
    %cst_19 = arith.constant dense<0.000000e+00> : vector<8x4xf32>
    %13 = tpu.matmul %10, %12, %cst_19 {dimension_numbers = #tpu.dot_dimension_numbers<[1], [0], [0], [1], [0, 0, 1, 1], [], []>} : vector<8x12xbf16>, vector<12x4xbf16>, vector<8x4xf32> -> vector<8x4xf32>
    %14 = vector.shape_cast %13 : vector<8x4xf32> to vector<1x8x4xf32>
    %c0_20 = arith.constant 0 : index
    %c0_21 = arith.constant 0 : index
    %15 = vector.load %arg3[%c0_20, %c0_21] : memref<1x4xf32, #tpu.memory_space<vmem>>, vector<1x4xf32>
    %16 = vector.shape_cast %15 : vector<1x4xf32> to vector<1x1x4xf32>
    %17 = vector.broadcast %16 : vector<1x1x4xf32> to vector<1x8x4xf32>
    %18 = arith.addf %14, %17 : vector<1x8x4xf32>
    %cst_22 = arith.constant 0.000000e+00 : f32
    %19 = vector.broadcast %cst_22 : f32 to vector<1x8x4xf32>
    %20 = arith.cmpf ogt, %18, %19 : vector<1x8x4xf32>
    %c0_23 = arith.constant 0 : index
    %c0_24 = arith.constant 0 : index
    %21 = vector.load %arg4[%c0_23, %c0_24] : memref<1x1xf32, #tpu.memory_space<vmem>>, vector<1x1xf32>
    %22 = vector.shape_cast %21 : vector<1x1xf32> to vector<1x1x1xf32>
    %23 = vector.broadcast %22 : vector<1x1x1xf32> to vector<1x8x4xf32>
    %24 = arith.mulf %23, %18 : vector<1x8x4xf32>
    %25 = arith.select %20, %18, %24 : vector<1x8x4xi1>, vector<1x8x4xf32>
    %c0_25 = arith.constant 0 : index
    %c1_26 = arith.constant 1 : index
    %c0_27 = arith.constant 0 : index
    %26 = vector.load %arg15[%c0_25, %c1_26, %c0_27] : memref<1x10x32xf32, #tpu.memory_space<vmem>>, vector<1x8x4xf32>
    tpu.vector_store %arg15[%c0_25, %c1_26, %c0_27], %25 {strides = array<i32>} : memref<1x10x32xf32, #tpu.memory_space<vmem>>, vector<1x8x4xf32>,
    %c0_28 = arith.constant 0 : index
    %c0_29 = arith.constant 0 : index
    %c0_30 = arith.constant 0 : index
    %27 = vector.load %arg15[%c0_28, %c0_29, %c0_30] : memref<1x10x32xf32, #tpu.memory_space<vmem>>, vector<1x8x4xf32>
    %c0_31 = arith.constant 0 : index
    %c1_32 = arith.constant 1 : index
    %c0_33 = arith.constant 0 : index
    %28 = vector.load %arg15[%c0_31, %c1_32, %c0_33] : memref<1x10x32xf32, #tpu.memory_space<vmem>>, vector<1x8x4xf32>
    %c0_34 = arith.constant 0 : index
    %c2_35 = arith.constant 2 : index
    %c0_36 = arith.constant 0 : index
    %29 = vector.load %arg15[%c0_34, %c2_35, %c0_36] : memref<1x10x32xf32, #tpu.memory_space<vmem>>, vector<1x8x4xf32>
    %30 = tpu.concatenate %27, %28, %29 in 2 : vector<1x8x4xf32>, vector<1x8x4xf32>, vector<1x8x4xf32> -> vector<1x8x12xf32>
    %31 = vector.shape_cast %30 : vector<1x8x12xf32> to vector<8x12xf32>
    %32 = arith.truncf %31 : vector<8x12xf32> to vector<8x12xbf16>
    %c0_37 = arith.constant 0 : index
    %c0_38 = arith.constant 0 : index
    %33 = vector.load %arg5[%c0_37, %c0_38] : memref<12x8xf32, #tpu.memory_space<vmem>>, vector<12x8xf32>
    %34 = arith.truncf %33 : vector<12x8xf32> to vector<12x8xbf16>
    %cst_39 = arith.constant dense<0.000000e+00> : vector<8x8xf32>
    %35 = tpu.matmul %32, %34, %cst_39 {dimension_numbers = #tpu.dot_dimension_numbers<[1], [0], [0], [1], [0, 0, 1, 1], [], []>} : vector<8x12xbf16>, vector<12x8xbf16>, vector<8x8xf32> -> vector<8x8xf32>
    %36 = vector.shape_cast %35 : vector<8x8xf32> to vector<1x8x8xf32>
    %c0_40 = arith.constant 0 : index
    %c0_41 = arith.constant 0 : index
    %37 = vector.load %arg6[%c0_40, %c0_41] : memref<1x8xf32, #tpu.memory_space<vmem>>, vector<1x8xf32>
    %38 = vector.shape_cast %37 : vector<1x8xf32> to vector<1x1x8xf32>
    %39 = vector.broadcast %38 : vector<1x1x8xf32> to vector<1x8x8xf32>
    %40 = arith.addf %36, %39 : vector<1x8x8xf32>
    %cst_42 = arith.constant 0.000000e+00 : f32
    %41 = vector.broadcast %cst_42 : f32 to vector<1x8x8xf32>
    %42 = arith.cmpf ogt, %40, %41 : vector<1x8x8xf32>
    %c0_43 = arith.constant 0 : index
    %c0_44 = arith.constant 0 : index
    %43 = vector.load %arg7[%c0_43, %c0_44] : memref<1x1xf32, #tpu.memory_space<vmem>>, vector<1x1xf32>
    %44 = vector.shape_cast %43 : vector<1x1xf32> to vector<1x1x1xf32>
    %45 = vector.broadcast %44 : vector<1x1x1xf32> to vector<1x8x8xf32>
    %46 = arith.mulf %45, %40 : vector<1x8x8xf32>
    %47 = arith.select %42, %40, %46 : vector<1x8x8xi1>, vector<1x8x8xf32>
    %c0_45 = arith.constant 0 : index
    %c1_46 = arith.constant 1 : index
    %c0_47 = arith.constant 0 : index
    %48 = vector.load %arg15[%c0_45, %c1_46, %c0_47] : memref<1x10x32xf32, #tpu.memory_space<vmem>>, vector<1x8x8xf32>
    tpu.vector_store %arg15[%c0_45, %c1_46, %c0_47], %47 {strides = array<i32>} : memref<1x10x32xf32, #tpu.memory_space<vmem>>, vector<1x8x8xf32>,
    %c0_48 = arith.constant 0 : index
    %c0_49 = arith.constant 0 : index
    %c0_50 = arith.constant 0 : index
    %49 = vector.load %arg15[%c0_48, %c0_49, %c0_50] : memref<1x10x32xf32, #tpu.memory_space<vmem>>, vector<1x8x8xf32>
    %c0_51 = arith.constant 0 : index
    %c1_52 = arith.constant 1 : index
    %c0_53 = arith.constant 0 : index
    %50 = vector.load %arg15[%c0_51, %c1_52, %c0_53] : memref<1x10x32xf32, #tpu.memory_space<vmem>>, vector<1x8x8xf32>
    %c0_54 = arith.constant 0 : index
    %c2_55 = arith.constant 2 : index
    %c0_56 = arith.constant 0 : index
    %51 = vector.load %arg15[%c0_54, %c2_55, %c0_56] : memref<1x10x32xf32, #tpu.memory_space<vmem>>, vector<1x8x8xf32>
    %52 = tpu.concatenate %49, %50, %51 in 2 : vector<1x8x8xf32>, vector<1x8x8xf32>, vector<1x8x8xf32> -> vector<1x8x24xf32>
    %53 = vector.shape_cast %52 : vector<1x8x24xf32> to vector<8x24xf32>
    %54 = arith.truncf %53 : vector<8x24xf32> to vector<8x24xbf16>
    %c0_57 = arith.constant 0 : index
    %c0_58 = arith.constant 0 : index
    %55 = vector.load %arg8[%c0_57, %c0_58] : memref<24x16xf32, #tpu.memory_space<vmem>>, vector<24x16xf32>
    %56 = arith.truncf %55 : vector<24x16xf32> to vector<24x16xbf16>
    %cst_59 = arith.constant dense<0.000000e+00> : vector<8x16xf32>
    %57 = tpu.matmul %54, %56, %cst_59 {dimension_numbers = #tpu.dot_dimension_numbers<[1], [0], [0], [1], [0, 0, 1, 1], [], []>} : vector<8x24xbf16>, vector<24x16xbf16>, vector<8x16xf32> -> vector<8x16xf32>
    %58 = vector.shape_cast %57 : vector<8x16xf32> to vector<1x8x16xf32>
    %c0_60 = arith.constant 0 : index
    %c0_61 = arith.constant 0 : index
    %59 = vector.load %arg9[%c0_60, %c0_61] : memref<1x16xf32, #tpu.memory_space<vmem>>, vector<1x16xf32>
    %60 = vector.shape_cast %59 : vector<1x16xf32> to vector<1x1x16xf32>
    %61 = vector.broadcast %60 : vector<1x1x16xf32> to vector<1x8x16xf32>
    %62 = arith.addf %58, %61 : vector<1x8x16xf32>
    %cst_62 = arith.constant 0.000000e+00 : f32
    %63 = vector.broadcast %cst_62 : f32 to vector<1x8x16xf32>
    %64 = arith.cmpf ogt, %62, %63 : vector<1x8x16xf32>
    %c0_63 = arith.constant 0 : index
    %c0_64 = arith.constant 0 : index
    %65 = vector.load %arg10[%c0_63, %c0_64] : memref<1x1xf32, #tpu.memory_space<vmem>>, vector<1x1xf32>
    %66 = vector.shape_cast %65 : vector<1x1xf32> to vector<1x1x1xf32>
    %67 = vector.broadcast %66 : vector<1x1x1xf32> to vector<1x8x16xf32>
    %68 = arith.mulf %67, %62 : vector<1x8x16xf32>
    %69 = arith.select %64, %62, %68 : vector<1x8x16xi1>, vector<1x8x16xf32>
    %c0_65 = arith.constant 0 : index
    %c1_66 = arith.constant 1 : index
    %c0_67 = arith.constant 0 : index
    %70 = vector.load %arg15[%c0_65, %c1_66, %c0_67] : memref<1x10x32xf32, #tpu.memory_space<vmem>>, vector<1x8x16xf32>
    tpu.vector_store %arg15[%c0_65, %c1_66, %c0_67], %69 {strides = array<i32>} : memref<1x10x32xf32, #tpu.memory_space<vmem>>, vector<1x8x16xf32>,
    %c0_68 = arith.constant 0 : index
    %c0_69 = arith.constant 0 : index
    %c0_70 = arith.constant 0 : index
    %71 = vector.load %arg15[%c0_68, %c0_69, %c0_70] : memref<1x10x32xf32, #tpu.memory_space<vmem>>, vector<1x8x16xf32>
    %c0_71 = arith.constant 0 : index
    %c1_72 = arith.constant 1 : index
    %c0_73 = arith.constant 0 : index
    %72 = vector.load %arg15[%c0_71, %c1_72, %c0_73] : memref<1x10x32xf32, #tpu.memory_space<vmem>>, vector<1x8x16xf32>
    %c0_74 = arith.constant 0 : index
    %c2_75 = arith.constant 2 : index
    %c0_76 = arith.constant 0 : index
    %73 = vector.load %arg15[%c0_74, %c2_75, %c0_76] : memref<1x10x32xf32, #tpu.memory_space<vmem>>, vector<1x8x16xf32>
    %74 = tpu.concatenate %71, %72, %73 in 2 : vector<1x8x16xf32>, vector<1x8x16xf32>, vector<1x8x16xf32> -> vector<1x8x48xf32>
    %75 = vector.shape_cast %74 : vector<1x8x48xf32> to vector<8x48xf32>
    %76 = arith.truncf %75 : vector<8x48xf32> to vector<8x48xbf16>
    %c0_77 = arith.constant 0 : index
    %c0_78 = arith.constant 0 : index
    %77 = vector.load %arg11[%c0_77, %c0_78] : memref<48x32xf32, #tpu.memory_space<vmem>>, vector<48x32xf32>
    %78 = arith.truncf %77 : vector<48x32xf32> to vector<48x32xbf16>
    %cst_79 = arith.constant dense<0.000000e+00> : vector<8x32xf32>
    %79 = tpu.matmul %76, %78, %cst_79 {dimension_numbers = #tpu.dot_dimension_numbers<[1], [0], [0], [1], [0, 0, 1, 1], [], []>} : vector<8x48xbf16>, vector<48x32xbf16>, vector<8x32xf32> -> vector<8x32xf32>
    %80 = vector.shape_cast %79 : vector<8x32xf32> to vector<1x8x32xf32>
    %c0_80 = arith.constant 0 : index
    %c0_81 = arith.constant 0 : index
    %81 = vector.load %arg12[%c0_80, %c0_81] : memref<1x32xf32, #tpu.memory_space<vmem>>, vector<1x32xf32>
    %82 = vector.shape_cast %81 : vector<1x32xf32> to vector<1x1x32xf32>
    %83 = vector.broadcast %82 : vector<1x1x32xf32> to vector<1x8x32xf32>
    %84 = arith.addf %80, %83 : vector<1x8x32xf32>
    %c0_82 = arith.constant 0 : index
    %c0_83 = arith.constant 0 : index
    %c0_84 = arith.constant 0 : index
    %85 = vector.load %arg14[%c0_82, %c0_83, %c0_84] : memref<1x8x32xf32, #tpu.memory_space<vmem>>, vector<1x8x32xf32>
    tpu.vector_store %arg14[%c0_82, %c0_83, %c0_84], %84 {strides = array<i32>} : memref<1x8x32xf32, #tpu.memory_space<vmem>>, vector<1x8x32xf32>,
    return
  }
  func.func @transform_0(%arg0: i32) -> (i32, i32, i32) {
    %c0_i32 = arith.constant 0 : i32
    %c0_i32_0 = arith.constant 0 : i32
    %c0_i32_1 = arith.constant 0 : i32
    return %arg0, %c0_i32, %c0_i32_0 : i32, i32, i32
  }
  func.func @transform_1(%arg0: i32) -> (i32, i32) {
    %c0_i32 = arith.constant 0 : i32
    %c0_i32_0 = arith.constant 0 : i32
    %c0_i32_1 = arith.constant 0 : i32
    return %c0_i32, %c0_i32_0 : i32, i32
  }
  func.func @transform_2(%arg0: i32) -> (i32, i32) {
    %c0_i32 = arith.constant 0 : i32
    %c0_i32_0 = arith.constant 0 : i32
    %c0_i32_1 = arith.constant 0 : i32
    return %c0_i32, %c0_i32_0 : i32, i32
  }
  func.func @transform_3(%arg0: i32) -> (i32, i32) {
    %c0_i32 = arith.constant 0 : i32
    %c0_i32_0 = arith.constant 0 : i32
    %c0_i32_1 = arith.constant 0 : i32
    return %c0_i32, %c0_i32_0 : i32, i32
  }
  func.func @transform_4(%arg0: i32) -> (i32, i32) {
    %c0_i32 = arith.constant 0 : i32
    %c0_i32_0 = arith.constant 0 : i32
    %c0_i32_1 = arith.constant 0 : i32
    return %c0_i32, %c0_i32_0 : i32, i32
  }
  func.func @transform_5(%arg0: i32) -> (i32, i32) {
    %c0_i32 = arith.constant 0 : i32
    %c0_i32_0 = arith.constant 0 : i32
    %c0_i32_1 = arith.constant 0 : i32
    return %c0_i32, %c0_i32_0 : i32, i32
  }
  func.func @transform_6(%arg0: i32) -> (i32, i32) {
    %c0_i32 = arith.constant 0 : i32
    %c0_i32_0 = arith.constant 0 : i32
    %c0_i32_1 = arith.constant 0 : i32
    return %c0_i32, %c0_i32_0 : i32, i32
  }
  func.func @transform_7(%arg0: i32) -> (i32, i32) {
    %c0_i32 = arith.constant 0 : i32
    %c0_i32_0 = arith.constant 0 : i32
    %c0_i32_1 = arith.constant 0 : i32
    return %c0_i32, %c0_i32_0 : i32, i32
  }
  func.func @transform_8(%arg0: i32) -> (i32, i32) {
    %c0_i32 = arith.constant 0 : i32
    %c0_i32_0 = arith.constant 0 : i32
    %c0_i32_1 = arith.constant 0 : i32
    return %c0_i32, %c0_i32_0 : i32, i32
  }
  func.func @transform_9(%arg0: i32) -> (i32, i32) {
    %c0_i32 = arith.constant 0 : i32
    %c0_i32_0 = arith.constant 0 : i32
    %c0_i32_1 = arith.constant 0 : i32
    return %c0_i32, %c0_i32_0 : i32, i32
  }
  func.func @transform_10(%arg0: i32) -> (i32, i32) {
    %c0_i32 = arith.constant 0 : i32
    %c0_i32_0 = arith.constant 0 : i32
    %c0_i32_1 = arith.constant 0 : i32
    return %c0_i32, %c0_i32_0 : i32, i32
  }
  func.func @transform_11(%arg0: i32) -> (i32, i32) {
    %c0_i32 = arith.constant 0 : i32
    %c0_i32_0 = arith.constant 0 : i32
    %c0_i32_1 = arith.constant 0 : i32
    return %c0_i32, %c0_i32_0 : i32, i32
  }
  func.func @transform_12(%arg0: i32) -> (i32, i32) {
    %c0_i32 = arith.constant 0 : i32
    %c0_i32_0 = arith.constant 0 : i32
    %c0_i32_1 = arith.constant 0 : i32
    return %c0_i32, %c0_i32_0 : i32, i32
  }
  func.func @transform_13(%arg0: i32) -> (i32, i32, i32) {
    %c0_i32 = arith.constant 0 : i32
    %c0_i32_0 = arith.constant 0 : i32
    %c0_i32_1 = arith.constant 0 : i32
    return %arg0, %c0_i32, %c0_i32_0 : i32, i32, i32
  }
}

</mosaic_0001>

<bundles_post_ra>
// kernel: aeconv_forward.4
= control target key start
LH: loop header
LB: loop body
LE: loop exit
PB: predicated region body
PF: predicated region fallthrough
CT: control target
= control target key end

     0   :  { %14 = vsyncpa [#allocation3], 0  ;;  %v429_v3 = vmov 0.0|0.0   ;;  %vm430_vm0 = vmmov 0   ;;  %v431_v6 = vmov 0.0   ;;  %s542_s0 = inlined_call_operand.vmem [shape: f32[2,32], index: 0, kind: input, shape index: {}]   ;;  %s543_s1 = inlined_call_operand.vmem [shape: f32[32,16], index: 1, kind: input, shape index: {}]   ;;  %s544_s2 = inlined_call_operand.vmem [shape: f32[1,16], index: 2, kind: input, shape index: {}]   ;;  %s545_s3 = inlined_call_operand.vmem [shape: f32[16,8], index: 3, kind: input, shape index: {}]   ;;  %s546_s4 = inlined_call_operand.vmem [shape: f32[1,8], index: 4, kind: input, shape index: {}]   ;;  %s547_s5 = inlined_call_operand.vmem [shape: f32[8,2], index: 5, kind: input, shape index: {}]   ;;  %s548_s6 = inlined_call_operand.vmem [shape: f32[1,2], index: 6, kind: input, shape index: {}]   ;;  %s549_s7 = inlined_call_operand.hbm [shape: f32[2,2], index: 7, kind: output, shape index: {0}]   ;;  %s550_s8 = inlined_call_operand.hbm [shape: f32[2,8], index: 8, kind: output, shape index: {1}]  }
   0x1   :  { %v31_v0 = vld [vmem:[%s543_s1] sm:$0xff]  ;;  %v32_v1 = vld [vmem:[%s543_s1 + $0x8] sm:$0xff]  ;;  %v33_v2 = vld [vmem:[%s543_s1 + $0x10] sm:$0xff]  ;;  %363 = vmatprep.subr.bf16.mxu0 %v429_v3  ;;  %348 = vmatprep.mubr.msk.f32.mxu0 %vm430_vm0, %v431_v6 }
   0x2   :  { %v364_v4 = vpack.c.bf16 %v32_v1, %v31_v0  ;;  %v34_v5 = vld [vmem:[%s543_s1 + $0x18] sm:$0xff]  ;;  %369 = vmatprep.subr.bf16.mxu1 %v429_v3  ;;  %355 = vmatprep.mubr.msk.f32.mxu1 %vm430_vm0, %v431_v6 }
   0x3   :  { %15 = vsyncpa [#allocation5], 0  ;;  %v367_v7 = vpack.c.bf16 %v34_v5, %v33_v2  ;;  %v30_v8 = vld [vmem:[%s542_s0] sm:$0x3]  ;;  %vm42_vm1 = vcmask 261120   ;;  %v117_v10 = vld [vmem:[%s545_s3 + $0x8] sm:$0xff] }
   0x4   :  { %365 = vmatpush3.bf16.msra.mxu0 %v364_v4  ;;  %v116_v9 = vld [vmem:[%s545_s3] sm:$0xff]  ;;  %vm125_vm2 = vcmask 130048   ;;  %vm207_vm3 = vcmask 64512   ;;  %vm294_vm4 = vcmask 58368   ;;  %vm281_vm5 = vcmask 9216  }
   0x5   :  { %366 = vmatprep.subr.bf16.mxu0 %v429_v3  ;;  %v370_v11 = vpack.c.bf16 %v117_v10, %v116_v9  ;;  %v324_v12 = vld [vmem:[%s544_s2] ss:$0 sm:$0xff] }
   0x6   :  { %v199_v16 = vld [vmem:[%s547_s5] sm:$0xff] }
   0x7   :  { %371 = vmatpush3.bf16.msra.mxu1 %v370_v11  ;;  %v326_v17 = vld [vmem:[%s546_s4] ss:$0 sm:$0xff]  ;;  %s432_s4 = smov [#allocation4]  }
   0x8   :  { %368 = vmatpush3.bf16.msra.mxu0 %v367_v7  ;;  %358 = vmatprep.subr.mxu1 %v431_v6  ;;  %v328_v21 = vld [vmem:[%s548_s6] ss:$0 sm:$0xff]  ;;  %s312_s5 = sshll.u32 %s432_s4, 4  ;;  %s313_s5 = int_to_ptr.vmem [resolvable:$true] %s312_s5 }
   0x9   :  { %s381_s23 = scalar_lea.vmem %s313_s5, 32  ;;  %p386_p1 = scmp.lt.s32.totalorder %s313_s5, %s313_s5 }
   0xa   :  { %p382_p0 = scmp.ne.s32.totalorder %s313_s5, %s381_s23  ;;  %p387_p2 = scmp.lt.s32.totalorder %s381_s23, %s381_s23 }
   0xb   :  { %349 = vmatmul.mubr.msk.f32.vlgmr.msra.gmra.mrb[0].mxu0 %vm42_vm1, %v30_v8 }
   0xc   :  { %p388_p3 = por %p387_p2, %p386_p1 }
   0xe   :  { %p389_p4 = pnand %p388_p3, %p382_p0 }
  0xde   :  { %v112_v13 = vpop.f32.mrb[0].mxu0 }
  0xdf   :  { %v113_v14 = vadd.f32 %v324_v12, %v112_v13  ;;  %v350_v15 = vpop.f32.mrb[1].mxu0 }
  0xe1   :  { %356 = vmatmul.mubr.msk.f32.vlgmr.msra.gmra.mrb[0].mxu1 %vm125_vm2, %v113_v14 }
  0xe2   :  { %359 = vmatpush3.msra.mxu1 %v199_v16  ;;  %360 = vmatprep.mubr.msk.f32.mxu1 %vm430_vm0, %v431_v6 }
 0x1b4   :  { %v195_v18 = vpop.f32.mrb[0].mxu1 }
 0x1b5   :  { %v196_v19 = vadd.f32 %v326_v17, %v195_v18  ;;  %v357_v20 = vpop.f32.mrb[1].mxu1 }
 0x1b7   :  { %361 = vmatmul.mubr.msk.f32.vlgmr.msra.gmra.mrb[2].mxu1 %vm207_vm3, %v196_v19  ;;  %295 = vst.msk [vmem:[#allocation4] sm:$0x3] %vm294_vm4, %v196_v19 }
 0x28a   :  { %v277_v22 = vpop.f32.mrb[2].mxu1 }
 0x28b   :  { %v278_v23 = vadd.f32 %v328_v21, %v277_v22  ;;  %v362_v24 = vpop.f32.mrb[3].mxu1 }
 0x28d   :  { %v282_v25 = vsel %vm281_vm5, %v278_v23, -inf }
 0x28e   :  { %283 = vmax.xlane.f32.xlu0 %v282_v25 }
 0x31b   :  { %v284_v26 = vpop.xlane.xlu0 %283 }
 0x31c   :  { %v285_v27 = vsub.f32 %v278_v23, %v284_v26 }
 0x31e   :  { %v286_v28 = vmul.f32 1.442695, %v285_v27 }
 0x320   :  { %377 = vpow2.f32 %v286_v28 }
 0x32a   :  { %v378_v29 = vpop.eup %377 }
 0x32b   :  { %v288_v30 = vsel %vm281_vm5, %v378_v29, 0.0 }
 0x32c   :  { %289 = vadd.xlane.f32.xlu0 %v288_v30 }
 0x32d   :  { %392 = shalt.err (!%p389_p4)
}
 0x32e   :  { %s393_s25 = scalar_lea.hbm %s550_s8, 32 }
 0x32f   :  { %p394_p5 = scmp.ne.s32.totalorder %s550_s8, %s393_s25  ;;  %p397_p6 = scmp.lt.u32.totalorder %s393_s25, %s550_s8 }
 0x331   :  { %p399_p7 = pnand %p397_p6, %p394_p5 }
 0x333   :  { %402 = shalt.err (!%p399_p7)
}
 0x334   :  { %315 = dma.vmem_to_hbm [thread:$0]  %s313_s5, 32, %s550_s8, [#allocation5]  }
 0x335   :  { %s433_s10 = smov [#allocation2]  }
 0x336   :  { %s302_s11 = sshll.u32 %s433_s10, 4  ;;  %s303_s11 = int_to_ptr.vmem [resolvable:$true] %s302_s11 }
 0x337   :  { %s403_s12 = scalar_lea.vmem %s303_s11, 32  ;;  %p408_p9 = scmp.lt.s32.totalorder %s303_s11, %s303_s11 }
 0x338   :  { %p404_p8 = scmp.ne.s32.totalorder %s303_s11, %s403_s12  ;;  %p409_p10 = scmp.lt.s32.totalorder %s403_s12, %s403_s12 }
 0x33a   :  { %p410_p11 = por %p409_p10, %p408_p9 }
 0x33c   :  { %p411_p12 = pnand %p410_p11, %p404_p8 }
 0x3b9   :  { %v290_v31 = vpop.xlane.xlu0 %289 }
 0x3ba   :  { %379 = vrcp.f32 %v290_v31 }
 0x3c4   :  { %v380_v32 = vpop.eup %379 }
 0x3c5   :  { %v292_v33 = vmul.f32 %v380_v32, %v378_v29 }
 0x3c7   :  { %293 = vst.msk [vmem:[#allocation2] sm:$0x3] %vm281_vm5, %v292_v33 }
 0x3c8   :  { %414 = shalt.err (!%p411_p12)
}
 0x3c9   :  { %s415_s8 = scalar_lea.hbm %s549_s7, 32 }
 0x3ca   :  { %p416_p13 = scmp.ne.s32.totalorder %s549_s7, %s415_s8  ;;  %p419_p0 = scmp.lt.u32.totalorder %s415_s8, %s549_s7 }
 0x3cc   :  { %p421_p1 = pnand %p419_p0, %p416_p13 }
 0x3ce   :  { %424 = shalt.err (!%p421_p1)
}
 0x3cf   :  { %305 = dma.vmem_to_hbm [thread:$0]  %s303_s11, 32, %s549_s7, [#allocation3]  }
 0x3d0   :  { %425 = dma.done.wait [#allocation3], 32  }
 0x3d1   :  { %426 = vsyncadd [#allocation3], 4294967264 }
 0x3d2   :  { %427 = dma.done.wait [#allocation5], 32  }
 0x3d3   :  { %428 = vsyncadd [#allocation5], 4294967264 }
 0x3d4   :  { %322 = vsyncpa [#allocation3], 1 }
 0x3d5   :  { %323 = vsyncpa [#allocation5], 1 }

// kernel: aeconv_forward.3
= control target key start
LH: loop header
LB: loop body
LE: loop exit
PB: predicated region body
PF: predicated region fallthrough
CT: control target
= control target key end

     0   :  { %s1156_s19 = smov 0   ;;  %s1305_s0 = inlined_call_operand.vmem [shape: f32[2,8,32], index: 0, kind: input, shape index: {}]   ;;  %s1306_s1 = inlined_call_operand.vmem [shape: f32[96,16], index: 1, kind: input, shape index: {}]   ;;  %s1307_s2 = inlined_call_operand.vmem [shape: f32[1,16], index: 2, kind: input, shape index: {}]   ;;  %s1308_s3 = inlined_call_operand.<no memory space> [shape: f32[1,1], index: 3, kind: input, shape index: {}]   ;;  %s1309_s4 = inlined_call_operand.vmem [shape: f32[48,8], index: 4, kind: input, shape index: {}]   ;;  %s1310_s5 = inlined_call_operand.vmem [shape: f32[1,8], index: 5, kind: input, shape index: {}]   ;;  %s1311_s7 = inlined_call_operand.vmem [shape: f32[24,4], index: 7, kind: input, shape index: {}]   ;;  %s1312_s8 = inlined_call_operand.vmem [shape: f32[1,4], index: 8, kind: input, shape index: {}]   ;;  %s1313_s10 = inlined_call_operand.vmem [shape: f32[12,4], index: 10, kind: input, shape index: {}]   ;;  %s1314_s11 = inlined_call_operand.vmem [shape: f32[1,4], index: 11, kind: input, shape index: {}]   ;;  %s1315_s13 = inlined_call_operand.vmem [shape: f32[2,8,4], index: 13, kind: output, shape index: {0}]   ;;  %s1316_s14 = inlined_call_operand.vmem [shape: f32[2,4,8], index: 14, kind: output, shape index: {1}]   ;;  %s1317_s6 = inlined_call_operand.<no memory space> [shape: f32[1,1], index: 6, kind: input, shape index: {}]   ;;  %s1318_s9 = inlined_call_operand.<no memory space> [shape: f32[1,1], index: 9, kind: input, shape index: {}]   ;;  %s1319_s12 = inlined_call_operand.<no memory space> [shape: f32[1,1], index: 12, kind: input, shape index: {}]  }
   0x1   :  { %v20_v0 = vstv %s1308_s3  ;;  %v22_v1 = vstv %s1317_s6  ;;  %v24_v2 = vstv %s1318_s9 }
   0x2   :  { %21 = vst [vmem:[#allocation3] sm:$0x1] %v20_v0  ;;  %23 = vst [vmem:[#allocation4] sm:$0x1] %v22_v1 }
   0x3   :  { %25 = vst [vmem:[#allocation5] sm:$0x1] %v24_v2 }
   0x4 LB: > { %s961_s3 = sadd.s32 4294967295, %s1062_s19   ;;  %p965_p0 = scmp.ge.s32.totalorder %s1062_s19, 1  ;;  %s1062_s19 = sphi %s1156_s19, %s33_s19  }
   0x5   : > { %p422_p1 = scmp.lt.s32.totalorder %s1062_s19, 3 }
   0x7   : > { %p423_p2 = pnand %p965_p0, %p422_p1 }
   0x8   : > { %p470_p3 = scmp.lt.s32.totalorder (!%p423_p2), %s961_s3, 1  ;;  %vm483_vm0 = vcmask (!%p423_p2), 253952   ;;  %v504_v3 = vld [vmem:[%s1306_s1] sm:$0xff] (!%p423_p2)  ;;  %v1064_v4 = vmov (!%p423_p2), 0.0   ;;  %v505_v5 = vld [vmem:[%s1306_s1 + $0x8] sm:$0xff] (!%p423_p2)  ;;  %v506_v6 = vld [vmem:[%s1306_s1 + $0x10] sm:$0xff] (!%p423_p2) }
   0x9   : > { %426 = sbr.rel (%p423_p2) target bundleno = 1531 (0x5fb), region = 72  ;;  %484 = vst.msk [vmem:[#allocation2] sm:$0x1] (!%p423_p2), %vm483_vm0, %v1064_v4  ;;  %485 = vst.msk [vmem:[#allocation2 + $0x9] sm:$0x1] (!%p423_p2), %vm483_vm0, %v1064_v4  ;;  %998 = vmatprep.subr.bf16.mxu0 (!%p423_p2), %v1064_v4  ;;  %v507_v7 = vld [vmem:[%s1306_s1 + $0x18] sm:$0xff] (!%p423_p2)  ;;  %1014 = vmatprep.subr.bf16.mxu1 (!%p423_p2), %v1064_v4  ;;  %v516_v8 = vpack.c.bf16 (!%p423_p2), %v505_v5, %v504_v3 }
   0xa   : > { %vm487_vm1 = vcmask (!%p423_p2), 261120   ;;  %v517_v9 = vpack.c.bf16 (!%p423_p2), %v507_v7, %v506_v6  ;;  %v508_v10 = vld [vmem:[%s1306_s1 + $0x20] sm:$0xff] (!%p423_p2)  ;;  %v509_v11 = vld [vmem:[%s1306_s1 + $0x28] sm:$0xff] (!%p423_p2)  ;;  %vm1065_vm2 = vmmov (!%p423_p2), 0   ;;  %v510_v14 = vld [vmem:[%s1306_s1 + $0x30] sm:$0xff] (!%p423_p2)  ;;  %v1066_v17 = vmov (!%p423_p2), 0  }
   0xb   : > { %999 = vmatpush3.bf16.msra.mxu0 (!%p423_p2), %v516_v8  ;;  %v518_v13 = vpack.c.bf16 (!%p423_p2), %v509_v11, %v508_v10  ;;  %1010 = vmatprep.mubr.msk.bf16.mxu0 (!%p423_p2), %vm1065_vm2, %v1064_v4  ;;  %v511_v15 = vld [vmem:[%s1306_s1 + $0x38] sm:$0xff] (!%p423_p2)  ;;  %v971_v16 = vld [vmem:[#allocation3] ss:$0 sm:$0xff] (!%p423_p2)  ;;  %v512_v19 = vld [vmem:[%s1306_s1 + $0x40] sm:$0xff] (!%p423_p2)  ;;  %s1067_s23 = smov (!%p423_p2), 32   ;;  %s1068_s29 = smov (!%p423_p2), 64  }
   0xc   : > { %1000 = vmatprep.subr.bf16.mxu0 (!%p423_p2), %v1064_v4  ;;  %1020 = vmatprep.mubr.msk.bf16.mxu1 (!%p423_p2), %vm1065_vm2, %v1064_v4  ;;  %v519_v18 = vpack.c.bf16 (!%p423_p2), %v511_v15, %v510_v14  ;;  %v513_v20 = vld [vmem:[%s1306_s1 + $0x48] sm:$0xff] (!%p423_p2)  ;;  %v514_v24 = vld [vmem:[%s1306_s1 + $0x50] sm:$0xff] (!%p423_p2)  ;;  %v515_v25 = vld [vmem:[%s1306_s1 + $0x58] sm:$0xff] (!%p423_p2)  ;;  %vm501_vm3 = vcmask (!%p423_p2), 523264   ;;  %vm522_vm4 = vcmask (!%p423_p2), 785408   ;;  %vm587_vm6 = vcmask (!%p423_p2), 130048  }
   0xd   : > { %1054 = vset.pattern.permute.xlu1 (!%p423_p2), %v1066_v17  ;;  %1055 = vset.pattern.permute.xlu0 (!%p423_p2), %v1066_v17  ;;  %v520_v23 = vpack.c.bf16 (!%p423_p2), %v513_v20, %v512_v19  ;;  %v521_v26 = vpack.c.bf16 (!%p423_p2), %v515_v25, %v514_v24  ;;  %v603_v33 = vld [vmem:[%s1309_s4] sm:$0xff] (!%p423_p2)  ;;  %v604_v34 = vld [vmem:[%s1309_s4 + $0x8] sm:$0xff] (!%p423_p2)  ;;  %v605_v35 = vld [vmem:[%s1309_s4 + $0x10] sm:$0xff] (!%p423_p2)  ;;  %vm612_vm7 = vcmask (!%p423_p2), 392192   ;;  %vm702_vm8 = vcmask (!%p423_p2), 1043456   ;;  %s1070_s9 = smov (!%p423_p2), 8  }
   0xe   : > { %582 = vperm.xlu1 (!%p423_p2), %1054, %v971_v16   ;;  %v609_v36 = vpack.c.bf16 (!%p423_p2), %v604_v34, %v603_v33  ;;  %v606_v37 = vld [vmem:[%s1309_s4 + $0x18] sm:$0xff] (!%p423_p2)  ;;  %v970_v39 = vld [vmem:[%s1307_s2] ss:$0 sm:$0xff] (!%p423_p2)  ;;  %v608_v41 = vld [vmem:[%s1309_s4 + $0x28] sm:$0xff] (!%p423_p2)  ;;  %vm677_vm10 = vcmask (!%p423_p2), 64512   ;;  %vm698_vm11 = vcmask (!%p423_p2), 195584  }
   0xf   : > { %1001 = vmatpush3.bf16.msra.mxu0 (!%p423_p2), %v517_v9  ;;  %v610_v38 = vpack.c.bf16 (!%p423_p2), %v606_v37, %v605_v35  ;;  %v607_v40 = vld [vmem:[%s1309_s4 + $0x20] sm:$0xff] (!%p423_p2)  ;;  %v974_v53 = vld [vmem:[#allocation4] ss:$0 sm:$0xff] (!%p423_p2)  ;;  %v694_v61 = vld [vmem:[%s1311_s7 + $0x8] sm:$0xff] (!%p423_p2)  ;;  %vm790_vm12 = vcmask (!%p423_p2), 1045504   ;;  %vm767_vm14 = vcmask (!%p423_p2), 31744  }
  0x10   : > { %s1321_s3 = smov (!%p470_p3, %s961_s3), 1  ;;  %1002 = vmatprep.subr.bf16.mxu0 %v1064_v4  ;;  %1015 = vmatpush3.bf16.msra.mxu1 %v609_v36  ;;  %v611_v44 = vpack.c.bf16 %v608_v41, %v607_v40  ;;  %v693_v60 = vld [vmem:[%s1311_s7] sm:$0xff]  ;;  %v695_v0 = vld [vmem:[%s1311_s7 + $0x10] sm:$0xff]  ;;  %s1071_s27 = smov 4   ;;  %vm786_vm15 = vcmask 97280   ;;  %vm875_vm0 = vcmask 60416  }
  0x11   : > { %s966_s25 = sshll.u32 %s1321_s3, 3  ;;  %1016 = vmatprep.subr.bf16.mxu1 %v1064_v4  ;;  %v696_v62 = vpack.c.bf16 %v694_v61, %v693_v60  ;;  %v973_v63 = vld [vmem:[%s1310_s5] ss:$0 sm:$0xff]  ;;  %v697_v1 = vpack.c.bf16 %v695_v0, %v695_v0  ;;  %v977_v14 = vld [vmem:[#allocation5] ss:$0 sm:$0xff]  ;;  %s968_s16 = sshll.u32 %s1321_s3, 2 }
  0x12   : > { %s473_s28 = scalar_lea.vmem %s1305_s0, %s966_s25  ;;  %v976_v25 = vld [vmem:[%s1312_s8] ss:$0 sm:$0xff]  ;;  %s477_s15 = scalar_lea.vmem %s1315_s13, %s966_s25 }
  0x13   : > { %v486_v12 = vld [vmem:[%s473_s28] sm:$0xff]  ;;  %1003 = vmatpush3.bf16.msra.mxu0 %v518_v13  ;;  %s1069_s28 = smov 16   ;;  %v704_v6 = vsel %vm702_vm8, %v697_v1, 0  ;;  %s481_s6 = scalar_lea.vmem %s1316_s14, %s968_s16 }
  0x14   : > { %488 = vst.msk [vmem:[#allocation2 + $0x1] sm:$0xff] %vm487_vm1, %v486_v12  ;;  %1004 = vmatprep.subr.bf16.mxu0 %v1064_v4  ;;  %1017 = vmatpush3.bf16.msra.mxu1 %v610_v38  ;;  %v979_v41 = vld [vmem:[%s1314_s11] ss:$0 sm:$0xff] }
  0x15   : > { %1018 = vmatprep.subr.bf16.mxu1 %v1064_v4 }
  0x17   : > { %1005 = vmatpush3.bf16.msra.mxu0 %v519_v18 }
  0x18   : > { %1006 = vmatprep.subr.bf16.mxu0 %v1064_v4  ;;  %1019 = vmatpush3.bf16.msra.mxu1 %v611_v44 }
  0x19   : > { %1024 = vmatprep.subr.bf16.mxu1 %v1064_v4 }
  0x1b   : > { %v490_v21 = vld [vmem:[#allocation2 + $0x1] sm:$0xff]  ;;  %1007 = vmatpush3.bf16.msra.mxu0 %v520_v23 }
  0x1c   : > { %493 = vrot.lane.b32.xlu0 %v490_v21, %s1067_s23  ;;  %v491_v22 = vld [vmem:[#allocation2 + $0x2] sm:$0xff]  ;;  %1008 = vmatprep.subr.bf16.mxu0 %v1064_v4 }
  0x1d   : > { %v489_v28 = vld [vmem:[#allocation2] sm:$0xff] }
  0x1e   : > { %v783_v21 = vld [vmem:[%s1313_s10] sm:$0xff] }
  0x1f   : > { %1009 = vmatpush3.bf16.msra.mxu0 %v521_v26 }
  0x20   : > { %497 = vrot.lane.b32.xlu0 %v491_v22, %s1068_s29  ;;  %v784_v22 = vld [vmem:[%s1313_s10 + $0x8] sm:$0xf] }
  0x21   : > { %v785_v23 = vpack.c.bf16 %v784_v22, %v783_v21 }
  0x23   : > { %v792_v24 = vsel %vm790_vm12, %v785_v23, 0 }
  0x8d   : > { %v583_v43 = vpop.permute.xlu1 %582 }
  0x8e   : > { %v494_v27 = vpop.permute.xlu0 %493 }
  0x8f   : > { %v500_v29 = vsel %vm487_vm1, %v489_v28, %v494_v27 }
  0x92   : > { %v498_v30 = vpop.permute.xlu0 %497 }
  0x93   : > { %v502_v31 = vsel %vm501_vm3, %v500_v29, %v498_v30 }
  0x94   : > { %v503_v32 = vpack.c.bf16 %v502_v31, %v502_v31 }
  0x96   : > { %1011 = vmatmul.mubr.msk.bf16.vlgmr.msra.gmra.mrb[0].mxu0 %vm522_vm4, %v503_v32 }
 0x169   : > { %v560_v42 = vpop.f32.mrb[0].mxu0 }
 0x16a   : > { %v573_v45 = vadd.f32 %v970_v39, %v560_v42  ;;  %v1012_v46 = vpop.f32.mrb[1].mxu0 }
 0x16b   : > { %v563_v47 = vpop.f32.mrb[2].mxu0 }
 0x16c   : > { %vm574_vm5 = vcmp.gt.f32.partialorder %v573_v45, 0.0  ;;  %v585_v48 = vmul.f32 %v583_v43, %v573_v45  ;;  %v1013_v49 = vpop.f32.mrb[3].mxu0 }
 0x16e   : > { %v586_v50 = vsel %vm574_vm5, %v573_v45, %v585_v48 }
 0x16f   : > { %588 = vst.msk [vmem:[#allocation2 + $0x1] sm:$0xff] %vm587_vm6, %v586_v50 }
 0x176   : > { %v591_v51 = vld [vmem:[#allocation2 + $0x2] sm:$0xff] }
 0x177   : > { %v590_v52 = vld [vmem:[#allocation2 + $0x1] sm:$0xff]  ;;  %597 = vrot.lane.b32.xlu0 %v591_v51, %s1067_s23 }
 0x178   : > { %593 = vrot.lane.b32.xlu1 %v590_v52, %s1069_s28  ;;  %v589_v56 = vld [vmem:[#allocation2] sm:$0xff] }
 0x17c   : > { %672 = vperm.xlu1 %1054, %v974_v53  }
 0x1e9   : > { %v598_v54 = vpop.permute.xlu0 %597 }
 0x1ea   : > { %v594_v55 = vpop.permute.xlu1 %593 }
 0x1eb   : > { %v600_v57 = vsel %vm587_vm6, %v589_v56, %v594_v55 }
 0x1ec   : > { %v601_v58 = vsel %vm487_vm1, %v600_v57, %v598_v54 }
 0x1ed   : > { %v602_v59 = vpack.c.bf16 %v601_v58, %v601_v58 }
 0x1ef   : > { %1021 = vmatmul.mubr.msk.bf16.vlgmr.msra.gmra.mrb[0].mxu1 %vm612_vm7, %v602_v59 }
 0x1f0   : > { %1028 = vmatprep.mubr.msk.bf16.mxu1 %vm1065_vm2, %v1064_v4  ;;  %1025 = vmatpush3.bf16.msra.mxu1 %v696_v62 }
 0x1f1   : > { %1026 = vmatprep.subr.bf16.mxu1 %v1064_v4 }
 0x1f4   : > { %1027 = vmatpush3.bf16.msra.mxu1 %v704_v6 }
 0x1f5   : > { %1032 = vmatprep.subr.bf16.mxu1 %v1064_v4 }
 0x1fb   : > { %v673_v7 = vpop.permute.xlu1 %672 }
 0x2c2   : > { %v650_v2 = vpop.f32.mrb[0].mxu1 }
 0x2c3   : > { %v663_v3 = vadd.f32 %v973_v63, %v650_v2  ;;  %v1022_v5 = vpop.f32.mrb[1].mxu1 }
 0x2c4   : > { %v653_v8 = vpop.f32.mrb[2].mxu1 }
 0x2c5   : > { %vm664_vm9 = vcmp.gt.f32.partialorder %v663_v3, 0.0  ;;  %v675_v9 = vmul.f32 %v673_v7, %v663_v3  ;;  %v1023_v10 = vpop.f32.mrb[3].mxu1 }
 0x2c7   : > { %v676_v11 = vsel %vm664_vm9, %v663_v3, %v675_v9 }
 0x2c8   : > { %678 = vst.msk [vmem:[#allocation2 + $0x1] sm:$0xff] %vm677_vm10, %v676_v11 }
 0x2cf   : > { %v681_v12 = vld [vmem:[#allocation2 + $0x2] sm:$0xff] }
 0x2d0   : > { %v680_v13 = vld [vmem:[#allocation2 + $0x1] sm:$0xff]  ;;  %687 = vrot.lane.b32.xlu1 %v681_v12, %s1069_s28 }
 0x2d1   : > { %683 = vrot.lane.b32.xlu0 %v680_v13, %s1070_s9  ;;  %v679_v17 = vld [vmem:[#allocation2] sm:$0xff] }
 0x2d5   : > { %762 = vperm.xlu0 %1055, %v977_v14  }
 0x342   : > { %v688_v15 = vpop.permute.xlu1 %687 }
 0x343   : > { %v684_v16 = vpop.permute.xlu0 %683 }
 0x344   : > { %v690_v18 = vsel %vm677_vm10, %v679_v17, %v684_v16 }
 0x345   : > { %v691_v19 = vsel %vm587_vm6, %v690_v18, %v688_v15 }
 0x346   : > { %v692_v20 = vpack.c.bf16 %v691_v19, %v691_v19 }
 0x348   : > { %1029 = vmatmul.mubr.msk.bf16.vlgmr.msra.gmra.mrb[4].mxu1 %vm698_vm11, %v692_v20 }
 0x349   : > { %1034 = vmatprep.mubr.msk.bf16.mxu1 %vm1065_vm2, %v1064_v4  ;;  %1033 = vmatpush3.bf16.msra.mxu1 %v792_v24 }
 0x354   : > { %v763_v27 = vpop.permute.xlu0 %762 }
 0x41b   : > { %v740_v26 = vpop.f32.mrb[4].mxu1 }
 0x41c   : > { %v753_v28 = vadd.f32 %v976_v25, %v740_v26  ;;  %v1030_v4 = vpop.f32.mrb[5].mxu1 }
 0x41d   : > { %v743_v29 = vpop.f32.mrb[6].mxu1 }
 0x41e   : > { %vm754_vm13 = vcmp.gt.f32.partialorder %v753_v28, 0.0  ;;  %v765_v30 = vmul.f32 %v763_v27, %v753_v28  ;;  %v1031_v31 = vpop.f32.mrb[7].mxu1 }
 0x420   : > { %v766_v32 = vsel %vm754_vm13, %v753_v28, %v765_v30 }
 0x421   : > { %768 = vst.msk [vmem:[#allocation2 + $0x1] sm:$0xff] %vm767_vm14, %v766_v32 }
 0x428   : > { %v770_v33 = vld [vmem:[#allocation2 + $0x1] sm:$0xff] }
 0x429   : > { %773 = vrot.lane.b32.xlu1 %v770_v33, %s1071_s27  ;;  %v771_v34 = vld [vmem:[#allocation2 + $0x2] sm:$0xff] }
 0x42a   : > { %v769_v36 = vld [vmem:[#allocation2] sm:$0xff] }
 0x42d   : > { %777 = vrot.lane.b32.xlu1 %v771_v34, %s1070_s9 }
 0x49b   : > { %v774_v35 = vpop.permute.xlu1 %773 }
 0x49c   : > { %v780_v37 = vsel %vm767_vm14, %v769_v36, %v774_v35 }
 0x49f   : > { %v778_v38 = vpop.permute.xlu1 %777 }
 0x4a0   : > { %v781_v39 = vsel %vm677_vm10, %v780_v37, %v778_v38 }
 0x4a1   : > { %v782_v40 = vpack.c.bf16 %v781_v39, %v781_v39 }
 0x4a3   : > { %1035 = vmatmul.mubr.msk.bf16.vlgmr.msra.gmra.mrb[8].mxu1 %vm786_vm15, %v782_v40 }
 0x576   : > { %v828_v42 = vpop.f32.mrb[8].mxu1 }
 0x577   : > { %v841_v43 = vadd.f32 %v979_v41, %v828_v42  ;;  %v1036_v44 = vpop.f32.mrb[9].mxu1 }
 0x578   : > { %v831_v45 = vpop.f32.mrb[10].mxu1 }
 0x579   : > { %842 = vst.msk [vmem:[%s477_s15] sm:$0xff] %vm767_vm14, %v841_v43  ;;  %843 = vxpose.xlu0.b32.start.end [1/1] (short) (narrow) %v841_v43, 8  ;;  %v1037_v46 = vpop.f32.mrb[11].mxu1 }
 0x5f9   : > { %v859_v47 = vpop.trf.xlu0 }
 0x5fa   : > { %876 = vst.msk [vmem:[%s481_s6] sm:$0xf] %vm875_vm0, %v859_v47 }
 0x5fb PF: > { %s33_s19 = sadd.s32 1, %s1062_s19  }
 0x5fc   : > { %p30_p4 = scmp.ge.s32.totalorder %s33_s19, 4  }
 0x5fe   :  { %32 = sbr.rel (!%p30_p4) target bundleno = 4 (0x4), region = 114 }

// kernel: aeconv_forward.5
= control target key start
LH: loop header
LB: loop body
LE: loop exit
PB: predicated region body
PF: predicated region fallthrough
CT: control target
= control target key end

     0   :  { %s1317_s0 = inlined_call_operand.vmem [shape: f32[2,8,4], index: 0, kind: input, shape index: {}]   ;;  %s1318_s1 = inlined_call_operand.vmem [shape: f32[12,4], index: 1, kind: input, shape index: {}]   ;;  %s1319_s2 = inlined_call_operand.vmem [shape: f32[1,4], index: 2, kind: input, shape index: {}]   ;;  %s1320_s3 = inlined_call_operand.<no memory space> [shape: f32[1,1], index: 3, kind: input, shape index: {}]   ;;  %s1321_s4 = inlined_call_operand.vmem [shape: f32[12,8], index: 4, kind: input, shape index: {}]   ;;  %s1322_s5 = inlined_call_operand.vmem [shape: f32[1,8], index: 5, kind: input, shape index: {}]   ;;  %s1323_s7 = inlined_call_operand.vmem [shape: f32[24,16], index: 7, kind: input, shape index: {}]   ;;  %s1324_s8 = inlined_call_operand.vmem [shape: f32[1,16], index: 8, kind: input, shape index: {}]   ;;  %s1325_s10 = inlined_call_operand.vmem [shape: f32[48,32], index: 10, kind: input, shape index: {}]   ;;  %s1326_s11 = inlined_call_operand.vmem [shape: f32[1,32], index: 11, kind: input, shape index: {}]   ;;  %s1327_s13 = inlined_call_operand.hbm [shape: f32[2,8,32], index: 13, kind: output, shape index: {}]   ;;  %s1328_s6 = inlined_call_operand.<no memory space> [shape: f32[1,1], index: 6, kind: input, shape index: {}]   ;;  %s1329_s9 = inlined_call_operand.<no memory space> [shape: f32[1,1], index: 9, kind: input, shape index: {}]   ;;  %s1330_s12 = inlined_call_operand.<no memory space> [shape: f32[1,1], index: 12, kind: input, shape index: {}]  }
   0x1   :  { %v18_v0 = vstv %s1320_s3  ;;  %v20_v1 = vstv %s1328_s6  ;;  %v22_v2 = vstv %s1329_s9 }
   0x2   :  { %19 = vst [vmem:[#allocation3] sm:$0x1] %v18_v0  ;;  %21 = vst [vmem:[#allocation4] sm:$0x1] %v20_v1 }
   0x3   :  { %23 = vst [vmem:[#allocation5] sm:$0x1] %v22_v2 }
   0x4   :  { %26 = vsyncpa [#allocation8], 0 }
   0x5   :  { %28 = vsyncpa [#allocation8 + $0x1], 0  ;;  %s1125_s14 = smov 0   ;;  %s1127_s12 = smov 0  }
   0x6   :  { %s1129_s15 = smov 0   ;;  %s1131_s3 = smov 0  }
   0x7 LB: > { %s1146_s6 = sadd.s32 4294967295, %s1036_s3   ;;  %s864_s9 = sadd.s32 4294967294, %s1036_s3   ;;  %s1036_s3 = sphi %s1131_s3, %s1336_s3   ;;  %s1032_s15 = sphi %s1129_s15, %s1335_s15   ;;  %s1028_s12 = sphi %s1127_s12, %s1334_s12   ;;  %s1024_s14 = sphi %s1125_s14, %s1333_s14  }
   0x8   : > { %s1150_s16 = sadd.s32 1, %s1036_s3   ;;  %s319_s17 = sadd.s32 1, %s1032_s15 }
   0x9   : > { %s316_s18 = ssub.s32 %s1036_s3, %s1150_s16  ;;  %p329_p0 = scmp.ne.s32.totalorder %s1032_s15, %s1028_s12 }
   0xa   : > { %p317_p1 = scmp.eq.s32.totalorder %s316_s18, 0  ;;  %p330_p2 = scmp.eq.s32.totalorder %s1146_s6, 1 }
   0xb   : > { %p335_p3 = scmp.ne.s32.totalorder %s1028_s12, %s1024_s14  ;;  %p336_p4 = scmp.eq.s32.totalorder %s864_s9, 1 }
   0xc   : > { %s1161_s19 = scalar_select %p317_p1, %s1032_s15, %s319_s17  }
   0xd   : > { %p1163_p5 = por %p330_p2, %p329_p0  ;;  %p1167_p6 = por %p336_p4, %p335_p3 }
   0xe   : > { %p867_p7 = scmp.ge.s32.totalorder %s1036_s3, 1  ;;  %p397_p8 = scmp.lt.s32.totalorder %s1036_s3, 3 }
  0x10   : > { %p398_p9 = pnand %p867_p7, %p397_p8 }
  0x11   : > { %p440_p10 = scmp.lt.s32.totalorder (!%p398_p9), %s1146_s6, 1  ;;  %vm445_vm0 = vcmask (!%p398_p9), 253952   ;;  %v1038_v3 = vmov (!%p398_p9), 0.0   ;;  %v466_v4 = vld [vmem:[%s1318_s1] sm:$0xff] (!%p398_p9)  ;;  %v467_v5 = vld [vmem:[%s1318_s1 + $0x8] sm:$0xf] (!%p398_p9) }
  0x12   : > { %401 = sbr.rel (%p398_p9) target bundleno = 1425 (0x591), region = 72  ;;  %446 = vst.msk [vmem:[#allocation2] sm:$0x1] (!%p398_p9), %vm445_vm0, %v1038_v3  ;;  %447 = vst.msk [vmem:[#allocation2 + $0x9] sm:$0x1] (!%p398_p9), %vm445_vm0, %v1038_v3  ;;  %896 = vmatprep.subr.bf16.mxu0 (!%p398_p9), %v1038_v3  ;;  %902 = vmatprep.subr.bf16.mxu1 (!%p398_p9), %v1038_v3  ;;  %v468_v6 = vpack.c.bf16 (!%p398_p9), %v467_v5, %v466_v4  ;;  %vm449_vm1 = vcmask (!%p398_p9), 31744  }
  0x13   : > { %vm473_vm2 = vcmask (!%p398_p9), 1045504   ;;  %vm1039_vm3 = vmmov (!%p398_p9), 0   ;;  %v872_v9 = vld [vmem:[#allocation3] ss:$0 sm:$0xff] (!%p398_p9)  ;;  %v1040_v10 = vmov (!%p398_p9), 0   ;;  %s1041_s9 = smov (!%p398_p9), 4  }
  0x14   : > { %v475_v7 = vsel (!%p398_p9), %vm473_vm2, %v468_v6, 0  ;;  %898 = vmatprep.mubr.msk.bf16.mxu0 (!%p398_p9), %vm1039_vm3, %v1038_v3  ;;  %904 = vmatprep.mubr.msk.bf16.mxu1 (!%p398_p9), %vm1039_vm3, %v1038_v3  ;;  %s1042_s17 = smov (!%p398_p9), 8   ;;  %vm463_vm4 = vcmask (!%p398_p9), 64512   ;;  %vm469_vm5 = vcmask (!%p398_p9), 97280   ;;  %v871_v19 = vld [vmem:[%s1319_s2] ss:$0 sm:$0xff] (!%p398_p9) }
  0x15   : > { %897 = vmatpush3.bf16.msra.mxu0 (!%p398_p9), %v475_v7  ;;  %972 = vset.pattern.permute.xlu1 (!%p398_p9), %v1040_v10  ;;  %v553_v20 = vld [vmem:[%s1321_s4] sm:$0xff] (!%p398_p9)  ;;  %v554_v21 = vld [vmem:[%s1321_s4 + $0x8] sm:$0xf] (!%p398_p9)  ;;  %v875_v34 = vld [vmem:[#allocation4] ss:$0 sm:$0xff] (!%p398_p9)  ;;  %vm648_vm7 = vcmask (!%p398_p9), 1043456  }
  0x16   : > { %908 = vmatprep.subr.bf16.mxu0 (!%p398_p9), %v1038_v3  ;;  %973 = vset.pattern.permute.xlu0 (!%p398_p9), %v1040_v10  ;;  %v555_v22 = vpack.c.bf16 (!%p398_p9), %v554_v21, %v553_v20  ;;  %v639_v41 = vld [vmem:[%s1323_s7] sm:$0xff] (!%p398_p9)  ;;  %v640_v42 = vld [vmem:[%s1323_s7 + $0x8] sm:$0xff] (!%p398_p9)  ;;  %v641_v45 = vld [vmem:[%s1323_s7 + $0x10] sm:$0xff] (!%p398_p9)  ;;  %s1043_s24 = smov (!%p398_p9), 16   ;;  %vm636_vm9 = vcmask (!%p398_p9), 130048   ;;  %vm644_vm10 = vcmask (!%p398_p9), 195584  }
  0x17   : > { %533 = vperm.xlu1 (!%p398_p9), %972, %v872_v9   ;;  %v642_v43 = vpack.c.bf16 (!%p398_p9), %v640_v42, %v639_v41  ;;  %v874_v44 = vld [vmem:[%s1322_s5] ss:$0 sm:$0xff] (!%p398_p9)  ;;  %v643_v46 = vpack.c.bf16 (!%p398_p9), %v641_v45, %v641_v45  ;;  %v878_v58 = vld [vmem:[#allocation5] ss:$0 sm:$0xff] (!%p398_p9)  ;;  %v730_v2 = vld [vmem:[%s1325_s10 + $0x8] sm:$0xff] (!%p398_p9)  ;;  %s1044_s28 = smov (!%p398_p9), 32  }
  0x18   : > { %v560_v27 = vsel (!%p398_p9), %vm473_vm2, %v555_v22, 0  ;;  %v729_v1 = vld [vmem:[%s1325_s10] sm:$0xff] (!%p398_p9)  ;;  %v731_v6 = vld [vmem:[%s1325_s10 + $0x10] sm:$0xff] (!%p398_p9)  ;;  %v732_v7 = vld [vmem:[%s1325_s10 + $0x18] sm:$0xff] (!%p398_p9)  ;;  %vm726_vm12 = vcmask (!%p398_p9), 261120   ;;  %vm738_vm13 = vcmask (!%p398_p9), 392192  }
  0x19   : > { %s441_s22 = scalar_select %p440_p10, %s1146_s6, 1  ;;  %903 = vmatpush3.bf16.msra.mxu1 %v560_v27  ;;  %v650_v50 = vsel %vm648_vm7, %v643_v46, 0  ;;  %v735_v4 = vpack.c.bf16 %v730_v2, %v729_v1  ;;  %v877_v5 = vld [vmem:[%s1324_s8] ss:$0 sm:$0xff] }
  0x1a   : > { %916 = vmatprep.subr.bf16.mxu1 %v1038_v3  ;;  %v880_v27 = vld [vmem:[%s1326_s11] ss:$0 sm:$0xff] }
  0x1b   : > { %s869_s27 = sshll.u32 %s441_s22, 3 }
  0x1c   : > { %s443_s30 = scalar_lea.vmem %s1317_s0, %s869_s27 }
  0x1d   : > { %v448_v8 = vld [vmem:[%s443_s30] sm:$0xff] }
  0x1e   : > { %450 = vst.msk [vmem:[#allocation2 + $0x1] sm:$0xff] %vm449_vm1, %v448_v8  ;;  %v736_v8 = vpack.c.bf16 %v732_v7, %v731_v6 }
  0x25   : > { %v452_v11 = vld [vmem:[#allocation2 + $0x1] sm:$0xff] }
  0x26   : > { %455 = vrot.lane.b32.xlu0 %v452_v11, %s1041_s9  ;;  %v453_v12 = vld [vmem:[#allocation2 + $0x2] sm:$0xff] }
  0x27   : > { %v451_v14 = vld [vmem:[#allocation2] sm:$0xff] }
  0x2a   : > { %459 = vrot.lane.b32.xlu0 %v453_v12, %s1042_s17 }
  0x96   : > { %v534_v24 = vpop.permute.xlu1 %533 }
  0x98   : > { %v456_v13 = vpop.permute.xlu0 %455 }
  0x99   : > { %v462_v15 = vsel %vm449_vm1, %v451_v14, %v456_v13  ;;  %v733_v14 = vld [vmem:[%s1325_s10 + $0x20] sm:$0xff] }
  0x9c   : > { %v460_v16 = vpop.permute.xlu0 %459 }
  0x9d   : > { %v464_v17 = vsel %vm463_vm4, %v462_v15, %v460_v16  ;;  %v734_v15 = vld [vmem:[%s1325_s10 + $0x28] sm:$0xff] }
  0x9e   : > { %v465_v18 = vpack.c.bf16 %v464_v17, %v464_v17 }
  0xa0   : > { %899 = vmatmul.mubr.msk.bf16.vlgmr.msra.gmra.mrb[0].mxu0 %vm469_vm5, %v465_v18  ;;  %v737_v18 = vpack.c.bf16 %v734_v15, %v733_v14 }
  0xa1   : > { %912 = vmatprep.mubr.msk.bf16.mxu0 %vm1039_vm3, %v1038_v3  ;;  %909 = vmatpush3.bf16.msra.mxu0 %v642_v43 }
  0xa2   : > { %910 = vmatprep.subr.bf16.mxu0 %v1038_v3 }
  0xa5   : > { %911 = vmatpush3.bf16.msra.mxu0 %v650_v50 }
 0x173   : > { %v511_v23 = vpop.f32.mrb[0].mxu0 }
 0x174   : > { %v524_v25 = vadd.f32 %v871_v19, %v511_v23  ;;  %v900_v26 = vpop.f32.mrb[1].mxu0 }
 0x175   : > { %v514_v28 = vpop.f32.mrb[2].mxu0 }
 0x176   : > { %vm525_vm6 = vcmp.gt.f32.partialorder %v524_v25, 0.0  ;;  %v536_v29 = vmul.f32 %v534_v24, %v524_v25  ;;  %v901_v30 = vpop.f32.mrb[3].mxu0 }
 0x178   : > { %v537_v31 = vsel %vm525_vm6, %v524_v25, %v536_v29 }
 0x179   : > { %538 = vst.msk [vmem:[#allocation2 + $0x1] sm:$0xff] %vm449_vm1, %v537_v31 }
 0x180   : > { %v541_v32 = vld [vmem:[#allocation2 + $0x2] sm:$0xff] }
 0x181   : > { %v540_v33 = vld [vmem:[#allocation2 + $0x1] sm:$0xff]  ;;  %547 = vrot.lane.b32.xlu0 %v541_v32, %s1042_s17 }
 0x182   : > { %543 = vrot.lane.b32.xlu1 %v540_v33, %s1041_s9  ;;  %v539_v37 = vld [vmem:[#allocation2] sm:$0xff] }
 0x186   : > { %618 = vperm.xlu1 %972, %v875_v34  }
 0x1f3   : > { %v548_v35 = vpop.permute.xlu0 %547 }
 0x1f4   : > { %v544_v36 = vpop.permute.xlu1 %543 }
 0x1f5   : > { %v550_v38 = vsel %vm449_vm1, %v539_v37, %v544_v36 }
 0x1f6   : > { %v551_v39 = vsel %vm463_vm4, %v550_v38, %v548_v35 }
 0x1f7   : > { %v552_v40 = vpack.c.bf16 %v551_v39, %v551_v39 }
 0x1f9   : > { %905 = vmatmul.mubr.msk.bf16.vlgmr.msra.gmra.mrb[0].mxu1 %vm469_vm5, %v552_v40 }
 0x1fa   : > { %922 = vmatprep.mubr.msk.bf16.mxu1 %vm1039_vm3, %v1038_v3  ;;  %917 = vmatpush3.bf16.msra.mxu1 %v735_v4 }
 0x1fb   : > { %918 = vmatprep.subr.bf16.mxu1 %v1038_v3 }
 0x1fe   : > { %919 = vmatpush3.bf16.msra.mxu1 %v736_v8 }
 0x1ff   : > { %920 = vmatprep.subr.bf16.mxu1 %v1038_v3 }
 0x202   : > { %921 = vmatpush3.bf16.msra.mxu1 %v737_v18 }
 0x205   : > { %v619_v51 = vpop.permute.xlu1 %618 }
 0x2cc   : > { %v596_v47 = vpop.f32.mrb[0].mxu1 }
 0x2cd   : > { %v609_v48 = vadd.f32 %v874_v44, %v596_v47  ;;  %v906_v49 = vpop.f32.mrb[1].mxu1 }
 0x2ce   : > { %v599_v52 = vpop.f32.mrb[2].mxu1 }
 0x2cf   : > { %vm610_vm8 = vcmp.gt.f32.partialorder %v609_v48, 0.0  ;;  %v621_v53 = vmul.f32 %v619_v51, %v609_v48  ;;  %v907_v54 = vpop.f32.mrb[3].mxu1 }
 0x2d1   : > { %v622_v55 = vsel %vm610_vm8, %v609_v48, %v621_v53 }
 0x2d2   : > { %623 = vst.msk [vmem:[#allocation2 + $0x1] sm:$0xff] %vm463_vm4, %v622_v55 }
 0x2d9   : > { %v626_v56 = vld [vmem:[#allocation2 + $0x2] sm:$0xff] }
 0x2da   : > { %v625_v57 = vld [vmem:[#allocation2 + $0x1] sm:$0xff]  ;;  %632 = vrot.lane.b32.xlu1 %v626_v56, %s1043_s24 }
 0x2db   : > { %628 = vrot.lane.b32.xlu0 %v625_v57, %s1042_s17  ;;  %v624_v61 = vld [vmem:[#allocation2] sm:$0xff]  ;;  %s437_s17 = sand.u32 1, %s1028_s12  }
 0x2dc   : > { %s868_s29 = sshll.u32 %s437_s17, 3 }
 0x2dd   : > { %s439_s18 = scalar_lea.vmem [#allocation7], %s868_s29 }
 0x2de   : > { %s805_s22 = sshll.u32 %s439_s18, 4  ;;  %s1276_s22 = int_to_ptr.vmem [resolvable:$true] %s805_s22 }
 0x2df   : > { %708 = vperm.xlu0 %973, %v878_v58   ;;  %s974_s27 = scalar_lea.vmem %s1276_s22, 128 }
 0x2e0   : > { %p975_p11 = scmp.ne.s32.totalorder %s1276_s22, %s974_s27 }
 0x2e2   : > { %p976_p12 = pnand %p975_p11, %p1163_p5 }
 0x2e4   : > { %p977_p13 = pneg %p976_p12 }
 0x34c   : > { %v633_v59 = vpop.permute.xlu1 %632 }
 0x34d   : > { %v629_v60 = vpop.permute.xlu0 %628 }
 0x34e   : > { %v635_v62 = vsel %vm463_vm4, %v624_v61, %v629_v60 }
 0x34f   : > { %v637_v63 = vsel %vm636_vm9, %v635_v62, %v633_v59 }
 0x350   : > { %v638_v0 = vpack.c.bf16 %v637_v63, %v637_v63 }
 0x352   : > { %913 = vmatmul.mubr.msk.bf16.vlgmr.msra.gmra.mrb[4].mxu0 %vm644_vm10, %v638_v0 }
 0x35e   : > { %v709_v10 = vpop.permute.xlu0 %708 }
 0x425   : > { %v686_v9 = vpop.f32.mrb[4].mxu0 }
 0x426   : > { %v699_v11 = vadd.f32 %v877_v5, %v686_v9  ;;  %v914_v12 = vpop.f32.mrb[5].mxu0 }
 0x427   : > { %v689_v13 = vpop.f32.mrb[6].mxu0 }
 0x428   : > { %vm700_vm11 = vcmp.gt.f32.partialorder %v699_v11, 0.0  ;;  %v711_v16 = vmul.f32 %v709_v10, %v699_v11  ;;  %v915_v17 = vpop.f32.mrb[7].mxu0 }
 0x42a   : > { %v712_v19 = vsel %vm700_vm11, %v699_v11, %v711_v16 }
 0x42b   : > { %713 = vst.msk [vmem:[#allocation2 + $0x1] sm:$0xff] %vm636_vm9, %v712_v19 }
 0x432   : > { %v715_v20 = vld [vmem:[#allocation2 + $0x1] sm:$0xff] }
 0x433   : > { %718 = vrot.lane.b32.xlu1 %v715_v20, %s1043_s24  ;;  %v716_v3 = vld [vmem:[#allocation2 + $0x2] sm:$0xff]  ;;  %s882_s24 = sshll.u32 %s1146_s6, 7  ;;  %s792_s6 = scalar_lea.sflag [#allocation8], %s437_s17 }
 0x434   : > { %v714_v22 = vld [vmem:[#allocation2] sm:$0xff]  ;;  %s1274_s26 = scalar_lea.hbm %s1327_s13, %s882_s24 }
 0x437   : > { %722 = vrot.lane.b32.xlu1 %v716_v3, %s1044_s28  ;;  %s1045_s28 = smov [#allocation7]  }
 0x438   : > { %s978_s29 = sshll.u32 %s1045_s28, 4  ;;  %s979_s29 = int_to_ptr.vmem [resolvable:$false] %s978_s29 }
 0x439   : > { %s980_s30 = scalar_lea.vmem %s979_s29, 256  ;;  %p981_p0 = scmp.lt.s32.totalorder %s1276_s22, %s979_s29 }
 0x43a   : > { %p982_p1 = scmp.lt.s32.totalorder %s980_s30, %s974_s27 }
 0x43c   : > { %p983_p2 = por %p982_p1, %p981_p0 }
 0x43e   : > { %p984_p3 = pnand %p983_p2, %p977_p13 }
 0x4a5   : > { %v719_v21 = vpop.permute.xlu1 %718 }
 0x4a6   : > { %v725_v23 = vsel %vm636_vm9, %v714_v22, %v719_v21 }
 0x4a9   : > { %v723_v24 = vpop.permute.xlu1 %722 }
 0x4aa   : > { %v727_v25 = vsel %vm726_vm12, %v725_v23, %v723_v24 }
 0x4ab   : > { %v728_v26 = vpack.c.bf16 %v727_v25, %v727_v25 }
 0x4ad   : > { %923 = vmatmul.mubr.msk.bf16.vlgmr.msra.gmra.mrb[4].mxu1 %vm738_vm13, %v728_v26 }
 0x580   : > { %v776_v28 = vpop.f32.mrb[4].mxu1 }
 0x581   : > { %v789_v29 = vadd.f32 %v880_v27, %v776_v28  ;;  %v924_v30 = vpop.f32.mrb[5].mxu1 }
 0x582   : > { %v779_v31 = vpop.f32.mrb[6].mxu1 }
 0x583   : > { %v925_v32 = vpop.f32.mrb[7].mxu1  ;;  %790 = vst.msk [vmem:[%s439_s18] sm:$0xff] %vm726_vm12, %v789_v29 }
 0x584   : > { %987 = shalt.err (!%p984_p3)
}
 0x585   : > { %s988_s17 = scalar_lea.hbm %s1274_s26, 128  ;;  %s992_s18 = scalar_lea.hbm %s1327_s13, 256 }
 0x586   : > { %p989_p4 = scmp.ne.s32.totalorder %s1274_s26, %s988_s17  ;;  %p993_p9 = scmp.lt.u32.totalorder %s1274_s26, %s1327_s13 }
 0x587   : > { %p994_p10 = scmp.lt.u32.totalorder %s992_s18, %s988_s17  ;;  %p996_p12 = scmp.lt.u32.totalorder %s988_s17, %s1274_s26 }
 0x588   : > { %p990_p7 = pnand %p989_p4, %p1163_p5 }
 0x589   : > { %p995_p11 = por %p994_p10, %p993_p9 }
 0x58a   : > { %p991_p8 = pneg %p990_p7 }
 0x58b   : > { %p997_p13 = por %p996_p12, %p995_p11 }
 0x58d   : > { %p998_p0 = pnand %p997_p13, %p991_p8 }
 0x58f   : > { %1001 = shalt.err (!%p998_p0)
}
 0x590   : > { %926 = dma.vmem_to_hbm [thread:$0]  (%p1163_p5), %s1276_s22, 128, %s1274_s26, %s792_s6  }
 0x591 PF: > { %p932_p1 = scmp.ge.s32.totalorder %s1036_s3, 2  ;;  %s817_s27 = sand.u32 1, %s1024_s14  }
 0x592   : > { %s818_s28 = scalar_lea.sflag [#allocation8], %s817_s27 }
 0x593   : > { %p929_p2 = pnand %p932_p1, %p1167_p6 }
 0x595   : > { %1019 = dma.done.wait (!%p929_p2), %s818_s28, 128  }
 0x596   : > { %1021 = vsyncadd (!%p929_p2), %s818_s28, 4294967168  ;;  %p31_p3 = scmp.ge.s32.totalorder %s1150_s16, 4   ;;  %s1333_s14 = smov %s1028_s12 }
 0x597   : > { %s1334_s12 = smov %s1032_s15  ;;  %s1335_s15 = smov %s1161_s19 }
 0x598   : > { %s1336_s3 = smov %s1150_s16  ;;  %33 = sbr.rel (!%p31_p3) target bundleno = 7 (0x7), region = 107 }
 0x59f   :  { %823 = vsyncpa [#allocation8], 1 }
 0x5a0   :  { %825 = vsyncpa [#allocation8 + $0x1], 1 }

</bundles_post_ra>
